<compile_context>
chip_gen: v5e
topology: v5e:2x2
jax: 0.10.0
libtpu: 0.0.40
codegen_flags: <defaults>
</compile_context>

<pallas_src>
import numpy as np
import jax
import jax.numpy as jnp
from jax import lax
from jax.experimental import pallas as pl
from jax.experimental.pallas import tpu as pltpu

# Model / problem sizes (small, consistent with the module's __init__).
V, E, H, O = 50, 32, 32, 24      # vocab, embedding_dim, hidden_dim, output_dim
B, T = 4, 8                      # batch, padded sequence length
G4 = 4 * H                       # stacked gate width [i, f, g, o]


# ----------------------------- in-kernel math -------------------------------
def _sigmoid(x):
    # single-EUP logistic: sigmoid(x) = 0.5*(tanh(x/2) + 1)
    return 0.5 * jnp.tanh(0.5 * x) + 0.5


def _erf(x):
    # Abramowitz & Stegun 7.1.26 rational approximation, |err| < 1.5e-7.
    # Kept (vs tanh-GELU) for exactness w.r.t. nn.GELU(); runs once in the
    # epilogue so it is off the recurrence critical path.
    a1, a2, a3, a4, a5 = 0.254829592, -0.284496736, 1.421413741, -1.453152027, 1.061405429
    p = 0.3275911
    s = jnp.where(x >= 0.0, 1.0, -1.0)
    ax = jnp.abs(x)
    t = 1.0 / (1.0 + p * ax)
    poly = ((((a5 * t + a4) * t + a3) * t + a2) * t + a1) * t
    return s * (1.0 - poly * jnp.exp(-ax * ax))


def _gelu(x):
    return 0.5 * x * (1.0 + _erf(x * 0.7071067811865476))


# ------------------------------- the kernel ---------------------------------
def lstm_head_kernel(emb_ref, mask_ref,
                     wih0_ref, whh0_ref, b0_ref,
                     w1cat_ref, b1_ref,
                     w1_ref, bl1_ref, w2_ref, bl2_ref,
                     label_ref,
                     logits_ref, loss_ref):
    # ---- hoist every weight/bias load out of the recurrence ----
    wih0 = wih0_ref[...]            # (E, 4H)
    whh0 = whh0_ref[...]            # (H, 4H)
    b0 = b0_ref[...]                # (1, 4H)   (= b_ih0 + b_hh0)
    w1cat = w1cat_ref[...]          # (2H, 4H)  (= [Wih1_T; Whh1_T])
    b1 = b1_ref[...]                # (1, 4H)
    mask = mask_ref[...]            # (T, B, H) f32 validity masks

    # Layer-0 input projection for ALL timesteps in a single MXU call
    # (no time dependency -> removed from the serial chain).
    gx0 = jnp.dot(emb_ref[...], wih0, preferred_element_type=jnp.float32) + b0  # (T*B, 4H)

    # lane mask selecting the tanh gate (g) out of gate order [i, f, g, o]
    lane = lax.broadcasted_iota(jnp.int32, (B, G4), 1)
    g_lane = (lane >= 2 * H) & (lane < 3 * H)

    def cell(gates, c):
        # full-width EUP ops + one lane-mask blend, then static lane slices
        th = jnp.tanh(gates)                       # (B, 4H)
        sg = 0.5 * jnp.tanh(0.5 * gates) + 0.5     # (B, 4H)
        act = jnp.where(g_lane, th, sg)
        i = act[:, 0 * H:1 * H]
        f = act[:, 1 * H:2 * H]
        g = act[:, 2 * H:3 * H]
        o = act[:, 3 * H:4 * H]
        c_new = f * c + i * g
        h_new = o * jnp.tanh(c_new)
        return h_new, c_new

    h0 = jnp.zeros((B, H), jnp.float32)
    c0 = jnp.zeros((B, H), jnp.float32)
    h1 = jnp.zeros((B, H), jnp.float32)
    c1 = jnp.zeros((B, H), jnp.float32)

    # Fully unrolled time loop (T is a compile-time constant): maximal LLO
    # scheduler visibility; all indices/slices below are static.
    for t in range(T):
        m = mask[t]                                            # (B, H)
        # layer 0: only the recurrent projection remains inside the loop
        g0 = gx0[t * B:(t + 1) * B, :] + jnp.dot(
            h0, whh0, preferred_element_type=jnp.float32)
        h0n, c0n = cell(g0, c0)
        # pack_padded_sequence freeze: state advances only while t < length[b]
        h0 = h0 + m * (h0n - h0)
        c0 = c0 + m * (c0n - c0)

        # layer 1: one fused matmul on [x_t, h] with stacked weights
        xh = jnp.concatenate([h0, h1], axis=1)                 # (B, 2H)
        g1 = jnp.dot(xh, w1cat, preferred_element_type=jnp.float32) + b1
        h1n, c1n = cell(g1, c1)
        h1 = h1 + m * (h1n - h1)
        c1 = c1 + m * (c1n - c1)

    # classifier head on hidden[-1] (last layer's final hidden state per seq)
    z = jnp.dot(h1, w1_ref[...], preferred_element_type=jnp.float32) + bl1_ref[...]
    z = _gelu(z)
    logits = jnp.dot(z, w2_ref[...], preferred_element_type=jnp.float32) + bl2_ref[...]
    logits_ref[...] = logits

    diff = logits - label_ref[...]
    mse = jnp.sum(diff * diff) * (1.0 / float(B * O))
    loss_ref[...] = _sigmoid(mse).reshape(1, 1)


# ------------------------------- JAX wrapper ---------------------------------
def lstm_forward(params, tokens, lengths, label):
    # Embedding gather is layout glue (plain JAX); LSTM recurrence, MLP head
    # and loss run inside the Pallas kernel.
    emb = jnp.take(params["embedding"], tokens, axis=0)                 # (B, T, E)
    emb2d = jnp.transpose(emb, (1, 0, 2)).reshape(T * B, E).astype(jnp.float32)

    # precomputed pack_padded_sequence validity masks, (T, B, H) f32
    step_valid = (jnp.arange(T, dtype=jnp.int32)[:, None]
                  < lengths.astype(jnp.int32)[None, :]).astype(jnp.float32)    # (T, B)
    mask_tbh = jnp.broadcast_to(step_valid[:, :, None], (T, B, H))

    # layer-1 weights stacked once so each cell is a single matmul on [h0, h1]
    w1cat = jnp.concatenate([params["wih1_T"], params["whh1_T"]], axis=0)      # (2H, 4H)

    args = (emb2d, mask_tbh,
            params["wih0_T"], params["whh0_T"], params["b_l0"],
            w1cat, params["b_l1"],
            params["w1_T"], params["b1"], params["w2_T"], params["b2"],
            label.astype(jnp.float32))

    vmem = pl.BlockSpec(memory_space=pltpu.MemorySpace.VMEM)
    # TODO(synk): on v7x with many independent batches, add a leading
    # "parallel" grid axis over batch groups so both TensorCores are used;
    # a single B=4 call necessarily runs on one TC.
    logits, loss = pl.pallas_call(
        lstm_head_kernel,
        out_shape=(jax.ShapeDtypeStruct((B, O), jnp.float32),
                   jax.ShapeDtypeStruct((1, 1), jnp.float32)),
        in_specs=[vmem] * len(args),
        out_specs=(vmem, vmem),
    )(*args)
    return logits, loss[0, 0]


# ------------------------- deterministic parameters --------------------------
def init_params(key):
    ks = jax.random.split(key, 14)
    k_lstm = 1.0 / np.sqrt(H)
    k_lin = 1.0 / np.sqrt(H)

    def u(k, shape, bound):
        return jax.random.uniform(k, shape, jnp.float32, -bound, bound)

    p = {}
    p["embedding"] = jax.random.normal(ks[0], (V, E), jnp.float32)   # nn.Embedding ~ N(0,1)
    # torch stores weight_ih_l* as (4H, in); pre-transpose so kernel does x @ W_T
    p["wih0_T"] = u(ks[1], (E, 4 * H), k_lstm)
    p["whh0_T"] = u(ks[2], (H, 4 * H), k_lstm)
    p["b_l0"] = u(ks[3], (1, 4 * H), k_lstm) + u(ks[4], (1, 4 * H), k_lstm)   # b_ih + b_hh
    p["wih1_T"] = u(ks[5], (H, 4 * H), k_lstm)
    p["whh1_T"] = u(ks[6], (H, 4 * H), k_lstm)
    p["b_l1"] = u(ks[7], (1, 4 * H), k_lstm) + u(ks[8], (1, 4 * H), k_lstm)
    p["w1_T"] = u(ks[9], (H, H), k_lin)
    p["b1"] = u(ks[10], (1, H), k_lin)
    p["w2_T"] = u(ks[11], (H, O), k_lin)
    p["b2"] = u(ks[12], (1, O), k_lin)
    return p


# --------------------------- pure-JAX reference ------------------------------
def reference_forward(params, tokens, lengths, label):
    emb = jnp.take(params["embedding"], tokens, axis=0)   # (B, T, E)
    h0 = jnp.zeros((B, H), jnp.float32)
    c0 = jnp.zeros((B, H), jnp.float32)
    h1 = jnp.zeros((B, H), jnp.float32)
    c1 = jnp.zeros((B, H), jnp.float32)

    def cell(x, h, c, wih, whh, b):
        gates = x @ wih + h @ whh + b
        i = jax.nn.sigmoid(gates[:, 0 * H:1 * H])
        f = jax.nn.sigmoid(gates[:, 1 * H:2 * H])
        g = jnp.tanh(gates[:, 2 * H:3 * H])
        o = jax.nn.sigmoid(gates[:, 3 * H:4 * H])
        cn = f * c + i * g
        return o * jnp.tanh(cn), cn

    for t in range(T):
        valid = (lengths > t)[:, None]
        x_t = emb[:, t, :]
        h0n, c0n = cell(x_t, h0, c0, params["wih0_T"], params["whh0_T"], params["b_l0"])
        h0 = jnp.where(valid, h0n, h0)
        c0 = jnp.where(valid, c0n, c0)
        h1n, c1n = cell(h0, h1, c1, params["wih1_T"], params["whh1_T"], params["b_l1"])
        h1 = jnp.where(valid, h1n, h1)
        c1 = jnp.where(valid, c1n, c1)

    z = h1 @ params["w1_T"] + params["b1"]
    z = 0.5 * z * (1.0 + jax.lax.erf(z / np.sqrt(2.0)))          # exact GELU
    logits = z @ params["w2_T"] + params["b2"]
    loss = jax.nn.sigmoid(jnp.mean((logits - label) ** 2))
    return logits, loss


# ----------------------------------- main ------------------------------------
if __name__ == "__main__":
    key = jax.random.PRNGKey(0)
    kp, kt, kl = jax.random.split(key, 3)
    params = init_params(kp)

    tokens = jax.random.randint(kt, (B, T), 0, V, dtype=jnp.int32)
    lengths = jnp.array([8, 5, 3, 6], dtype=jnp.int32)       # variable lengths <= T
    label = jax.random.normal(kl, (B, O), jnp.float32)

    logits, loss = lstm_forward(params, tokens, lengths, label)
    logits, loss = jax.block_until_ready((logits, loss))

    ref_logits, ref_loss = reference_forward(params, tokens, lengths, label)
    assert np.allclose(np.asarray(logits), np.asarray(ref_logits), atol=1e-3, rtol=1e-3)
    assert np.allclose(np.asarray(loss), np.asarray(ref_loss), atol=1e-3, rtol=1e-3)

    print("KERNEL_OK")
</pallas_src>

<mosaic_0001>
module attributes {stable_mosaic.version = 11 : i64} {
  func.func @lstm_head_kernel(%arg0: memref<32x32xf32, #tpu.memory_space<vmem>>, %arg1: memref<8x4x32xf32, #tpu.memory_space<vmem>>, %arg2: memref<32x128xf32, #tpu.memory_space<vmem>>, %arg3: memref<32x128xf32, #tpu.memory_space<vmem>>, %arg4: memref<1x128xf32, #tpu.memory_space<vmem>>, %arg5: memref<64x128xf32, #tpu.memory_space<vmem>>, %arg6: memref<1x128xf32, #tpu.memory_space<vmem>>, %arg7: memref<32x32xf32, #tpu.memory_space<vmem>>, %arg8: memref<1x32xf32, #tpu.memory_space<vmem>>, %arg9: memref<32x24xf32, #tpu.memory_space<vmem>>, %arg10: memref<1x24xf32, #tpu.memory_space<vmem>>, %arg11: memref<4x24xf32, #tpu.memory_space<vmem>>, %arg12: memref<4x24xf32, #tpu.memory_space<vmem>>, %arg13: memref<1x1xf32, #tpu.memory_space<vmem>>) attributes {dimension_semantics = [], scalar_prefetch = 0 : i64, scratch_operands = 0 : i64, tpu.core_type = #tpu.core_type<tc>} {
    %c0 = arith.constant 0 : index
    %c0_0 = arith.constant 0 : index
    %0 = vector.load %arg2[%c0, %c0_0] : memref<32x128xf32, #tpu.memory_space<vmem>>, vector<32x128xf32>
    %c0_1 = arith.constant 0 : index
    %c0_2 = arith.constant 0 : index
    %1 = vector.load %arg3[%c0_1, %c0_2] : memref<32x128xf32, #tpu.memory_space<vmem>>, vector<32x128xf32>
    %c0_3 = arith.constant 0 : index
    %c0_4 = arith.constant 0 : index
    %2 = vector.load %arg4[%c0_3, %c0_4] : memref<1x128xf32, #tpu.memory_space<vmem>>, vector<1x128xf32>
    %c0_5 = arith.constant 0 : index
    %c0_6 = arith.constant 0 : index
    %3 = vector.load %arg5[%c0_5, %c0_6] : memref<64x128xf32, #tpu.memory_space<vmem>>, vector<64x128xf32>
    %c0_7 = arith.constant 0 : index
    %c0_8 = arith.constant 0 : index
    %4 = vector.load %arg6[%c0_7, %c0_8] : memref<1x128xf32, #tpu.memory_space<vmem>>, vector<1x128xf32>
    %c0_9 = arith.constant 0 : index
    %c0_10 = arith.constant 0 : index
    %c0_11 = arith.constant 0 : index
    %5 = vector.load %arg1[%c0_9, %c0_10, %c0_11] : memref<8x4x32xf32, #tpu.memory_space<vmem>>, vector<8x4x32xf32>
    %c0_12 = arith.constant 0 : index
    %c0_13 = arith.constant 0 : index
    %6 = vector.load %arg0[%c0_12, %c0_13] : memref<32x32xf32, #tpu.memory_space<vmem>>, vector<32x32xf32>
    %cst = arith.constant dense<0.000000e+00> : vector<32x128xf32>
    %7 = tpu.matmul %6, %0, %cst {dimension_numbers = #tpu.dot_dimension_numbers<[1], [0], [0], [1], [0, 0, 1, 1], [], []>} : vector<32x32xf32>, vector<32x128xf32>, vector<32x128xf32> -> vector<32x128xf32>
    %8 = vector.broadcast %2 : vector<1x128xf32> to vector<32x128xf32>
    %9 = arith.addf %7, %8 : vector<32x128xf32>
    %10 = tpu.iota {dimensions = array<i32: 1>} : vector<4x128xi32>
    %c64_i32 = arith.constant 64 : i32
    %11 = vector.broadcast %c64_i32 : i32 to vector<4x128xi32>
    %12 = arith.cmpi sge, %10, %11 : vector<4x128xi32>
    %c96_i32 = arith.constant 96 : i32
    %13 = vector.broadcast %c96_i32 : i32 to vector<4x128xi32>
    %14 = arith.cmpi slt, %10, %13 : vector<4x128xi32>
    %15 = arith.andi %12, %14 : vector<4x128xi1>
    %cst_14 = arith.constant 0.000000e+00 : f32
    %16 = vector.broadcast %cst_14 : f32 to vector<4x32xf32>
    %cst_15 = arith.constant 0.000000e+00 : f32
    %17 = vector.broadcast %cst_15 : f32 to vector<4x32xf32>
    %cst_16 = arith.constant 0.000000e+00 : f32
    %18 = vector.broadcast %cst_16 : f32 to vector<4x32xf32>
    %cst_17 = arith.constant 0.000000e+00 : f32
    %19 = vector.broadcast %cst_17 : f32 to vector<4x32xf32>
    %20 = vector.extract_strided_slice %5 {offsets = [0, 0, 0], sizes = [1, 4, 32], strides = [1, 1, 1]} : vector<8x4x32xf32> to vector<1x4x32xf32>
    %21 = vector.shape_cast %20 : vector<1x4x32xf32> to vector<4x32xf32>
    %22 = vector.extract_strided_slice %9 {offsets = [0, 0], sizes = [4, 128], strides = [1, 1]} : vector<32x128xf32> to vector<4x128xf32>
    %cst_18 = arith.constant dense<0.000000e+00> : vector<4x128xf32>
    %23 = tpu.matmul %16, %1, %cst_18 {dimension_numbers = #tpu.dot_dimension_numbers<[1], [0], [0], [1], [0, 0, 1, 1], [], []>} : vector<4x32xf32>, vector<32x128xf32>, vector<4x128xf32> -> vector<4x128xf32>
    %24 = arith.addf %22, %23 : vector<4x128xf32>
    %25 = math.tanh %24 : vector<4x128xf32>
    %cst_19 = arith.constant 5.000000e-01 : f32
    %26 = vector.broadcast %cst_19 : f32 to vector<4x128xf32>
    %27 = arith.mulf %26, %24 : vector<4x128xf32>
    %28 = math.tanh %27 : vector<4x128xf32>
    %cst_20 = arith.constant 5.000000e-01 : f32
    %29 = vector.broadcast %cst_20 : f32 to vector<4x128xf32>
    %30 = arith.mulf %29, %28 : vector<4x128xf32>
    %cst_21 = arith.constant 5.000000e-01 : f32
    %31 = vector.broadcast %cst_21 : f32 to vector<4x128xf32>
    %32 = arith.addf %30, %31 : vector<4x128xf32>
    %33 = arith.select %15, %25, %32 : vector<4x128xi1>, vector<4x128xf32>
    %34 = vector.extract_strided_slice %33 {offsets = [0, 0], sizes = [4, 32], strides = [1, 1]} : vector<4x128xf32> to vector<4x32xf32>
    %35 = vector.extract_strided_slice %33 {offsets = [0, 32], sizes = [4, 32], strides = [1, 1]} : vector<4x128xf32> to vector<4x32xf32>
    %36 = vector.extract_strided_slice %33 {offsets = [0, 64], sizes = [4, 32], strides = [1, 1]} : vector<4x128xf32> to vector<4x32xf32>
    %37 = vector.extract_strided_slice %33 {offsets = [0, 96], sizes = [4, 32], strides = [1, 1]} : vector<4x128xf32> to vector<4x32xf32>
    %38 = arith.mulf %35, %17 : vector<4x32xf32>
    %39 = arith.mulf %34, %36 : vector<4x32xf32>
    %40 = arith.addf %38, %39 : vector<4x32xf32>
    %41 = math.tanh %40 : vector<4x32xf32>
    %42 = arith.mulf %37, %41 : vector<4x32xf32>
    %43 = arith.subf %42, %16 : vector<4x32xf32>
    %44 = arith.mulf %21, %43 : vector<4x32xf32>
    %45 = arith.addf %16, %44 : vector<4x32xf32>
    %46 = arith.subf %40, %17 : vector<4x32xf32>
    %47 = arith.mulf %21, %46 : vector<4x32xf32>
    %48 = arith.addf %17, %47 : vector<4x32xf32>
    %49 = tpu.concatenate %45, %18 in 1 : vector<4x32xf32>, vector<4x32xf32> -> vector<4x64xf32>
    %cst_22 = arith.constant dense<0.000000e+00> : vector<4x128xf32>
    %50 = tpu.matmul %49, %3, %cst_22 {dimension_numbers = #tpu.dot_dimension_numbers<[1], [0], [0], [1], [0, 0, 1, 1], [], []>} : vector<4x64xf32>, vector<64x128xf32>, vector<4x128xf32> -> vector<4x128xf32>
    %51 = vector.broadcast %4 : vector<1x128xf32> to vector<4x128xf32>
    %52 = arith.addf %50, %51 : vector<4x128xf32>
    %53 = math.tanh %52 : vector<4x128xf32>
    %cst_23 = arith.constant 5.000000e-01 : f32
    %54 = vector.broadcast %cst_23 : f32 to vector<4x128xf32>
    %55 = arith.mulf %54, %52 : vector<4x128xf32>
    %56 = math.tanh %55 : vector<4x128xf32>
    %cst_24 = arith.constant 5.000000e-01 : f32
    %57 = vector.broadcast %cst_24 : f32 to vector<4x128xf32>
    %58 = arith.mulf %57, %56 : vector<4x128xf32>
    %cst_25 = arith.constant 5.000000e-01 : f32
    %59 = vector.broadcast %cst_25 : f32 to vector<4x128xf32>
    %60 = arith.addf %58, %59 : vector<4x128xf32>
    %61 = arith.select %15, %53, %60 : vector<4x128xi1>, vector<4x128xf32>
    %62 = vector.extract_strided_slice %61 {offsets = [0, 0], sizes = [4, 32], strides = [1, 1]} : vector<4x128xf32> to vector<4x32xf32>
    %63 = vector.extract_strided_slice %61 {offsets = [0, 32], sizes = [4, 32], strides = [1, 1]} : vector<4x128xf32> to vector<4x32xf32>
    %64 = vector.extract_strided_slice %61 {offsets = [0, 64], sizes = [4, 32], strides = [1, 1]} : vector<4x128xf32> to vector<4x32xf32>
    %65 = vector.extract_strided_slice %61 {offsets = [0, 96], sizes = [4, 32], strides = [1, 1]} : vector<4x128xf32> to vector<4x32xf32>
    %66 = arith.mulf %63, %19 : vector<4x32xf32>
    %67 = arith.mulf %62, %64 : vector<4x32xf32>
    %68 = arith.addf %66, %67 : vector<4x32xf32>
    %69 = math.tanh %68 : vector<4x32xf32>
    %70 = arith.mulf %65, %69 : vector<4x32xf32>
    %71 = arith.subf %70, %18 : vector<4x32xf32>
    %72 = arith.mulf %21, %71 : vector<4x32xf32>
    %73 = arith.addf %18, %72 : vector<4x32xf32>
    %74 = arith.subf %68, %19 : vector<4x32xf32>
    %75 = arith.mulf %21, %74 : vector<4x32xf32>
    %76 = arith.addf %19, %75 : vector<4x32xf32>
    %77 = vector.extract_strided_slice %5 {offsets = [1, 0, 0], sizes = [1, 4, 32], strides = [1, 1, 1]} : vector<8x4x32xf32> to vector<1x4x32xf32>
    %78 = vector.shape_cast %77 : vector<1x4x32xf32> to vector<4x32xf32>
    %79 = vector.extract_strided_slice %9 {offsets = [4, 0], sizes = [4, 128], strides = [1, 1]} : vector<32x128xf32> to vector<4x128xf32>
    %cst_26 = arith.constant dense<0.000000e+00> : vector<4x128xf32>
    %80 = tpu.matmul %45, %1, %cst_26 {dimension_numbers = #tpu.dot_dimension_numbers<[1], [0], [0], [1], [0, 0, 1, 1], [], []>} : vector<4x32xf32>, vector<32x128xf32>, vector<4x128xf32> -> vector<4x128xf32>
    %81 = arith.addf %79, %80 : vector<4x128xf32>
    %82 = math.tanh %81 : vector<4x128xf32>
    %cst_27 = arith.constant 5.000000e-01 : f32
    %83 = vector.broadcast %cst_27 : f32 to vector<4x128xf32>
    %84 = arith.mulf %83, %81 : vector<4x128xf32>
    %85 = math.tanh %84 : vector<4x128xf32>
    %cst_28 = arith.constant 5.000000e-01 : f32
    %86 = vector.broadcast %cst_28 : f32 to vector<4x128xf32>
    %87 = arith.mulf %86, %85 : vector<4x128xf32>
    %cst_29 = arith.constant 5.000000e-01 : f32
    %88 = vector.broadcast %cst_29 : f32 to vector<4x128xf32>
    %89 = arith.addf %87, %88 : vector<4x128xf32>
    %90 = arith.select %15, %82, %89 : vector<4x128xi1>, vector<4x128xf32>
    %91 = vector.extract_strided_slice %90 {offsets = [0, 0], sizes = [4, 32], strides = [1, 1]} : vector<4x128xf32> to vector<4x32xf32>
    %92 = vector.extract_strided_slice %90 {offsets = [0, 32], sizes = [4, 32], strides = [1, 1]} : vector<4x128xf32> to vector<4x32xf32>
    %93 = vector.extract_strided_slice %90 {offsets = [0, 64], sizes = [4, 32], strides = [1, 1]} : vector<4x128xf32> to vector<4x32xf32>
    %94 = vector.extract_strided_slice %90 {offsets = [0, 96], sizes = [4, 32], strides = [1, 1]} : vector<4x128xf32> to vector<4x32xf32>
    %95 = arith.mulf %92, %48 : vector<4x32xf32>
    %96 = arith.mulf %91, %93 : vector<4x32xf32>
    %97 = arith.addf %95, %96 : vector<4x32xf32>
    %98 = math.tanh %97 : vector<4x32xf32>
    %99 = arith.mulf %94, %98 : vector<4x32xf32>
    %100 = arith.subf %99, %45 : vector<4x32xf32>
    %101 = arith.mulf %78, %100 : vector<4x32xf32>
    %102 = arith.addf %45, %101 : vector<4x32xf32>
    %103 = arith.subf %97, %48 : vector<4x32xf32>
    %104 = arith.mulf %78, %103 : vector<4x32xf32>
    %105 = arith.addf %48, %104 : vector<4x32xf32>
    %106 = tpu.concatenate %102, %73 in 1 : vector<4x32xf32>, vector<4x32xf32> -> vector<4x64xf32>
    %cst_30 = arith.constant dense<0.000000e+00> : vector<4x128xf32>
    %107 = tpu.matmul %106, %3, %cst_30 {dimension_numbers = #tpu.dot_dimension_numbers<[1], [0], [0], [1], [0, 0, 1, 1], [], []>} : vector<4x64xf32>, vector<64x128xf32>, vector<4x128xf32> -> vector<4x128xf32>
    %108 = vector.broadcast %4 : vector<1x128xf32> to vector<4x128xf32>
    %109 = arith.addf %107, %108 : vector<4x128xf32>
    %110 = math.tanh %109 : vector<4x128xf32>
    %cst_31 = arith.constant 5.000000e-01 : f32
    %111 = vector.broadcast %cst_31 : f32 to vector<4x128xf32>
    %112 = arith.mulf %111, %109 : vector<4x128xf32>
    %113 = math.tanh %112 : vector<4x128xf32>
    %cst_32 = arith.constant 5.000000e-01 : f32
    %114 = vector.broadcast %cst_32 : f32 to vector<4x128xf32>
    %115 = arith.mulf %114, %113 : vector<4x128xf32>
    %cst_33 = arith.constant 5.000000e-01 : f32
    %116 = vector.broadcast %cst_33 : f32 to vector<4x128xf32>
    %117 = arith.addf %115, %116 : vector<4x128xf32>
    %118 = arith.select %15, %110, %117 : vector<4x128xi1>, vector<4x128xf32>
    %119 = vector.extract_strided_slice %118 {offsets = [0, 0], sizes = [4, 32], strides = [1, 1]} : vector<4x128xf32> to vector<4x32xf32>
    %120 = vector.extract_strided_slice %118 {offsets = [0, 32], sizes = [4, 32], strides = [1, 1]} : vector<4x128xf32> to vector<4x32xf32>
    %121 = vector.extract_strided_slice %118 {offsets = [0, 64], sizes = [4, 32], strides = [1, 1]} : vector<4x128xf32> to vector<4x32xf32>
    %122 = vector.extract_strided_slice %118 {offsets = [0, 96], sizes = [4, 32], strides = [1, 1]} : vector<4x128xf32> to vector<4x32xf32>
    %123 = arith.mulf %120, %76 : vector<4x32xf32>
    %124 = arith.mulf %119, %121 : vector<4x32xf32>
    %125 = arith.addf %123, %124 : vector<4x32xf32>
    %126 = math.tanh %125 : vector<4x32xf32>
    %127 = arith.mulf %122, %126 : vector<4x32xf32>
    %128 = arith.subf %127, %73 : vector<4x32xf32>
    %129 = arith.mulf %78, %128 : vector<4x32xf32>
    %130 = arith.addf %73, %129 : vector<4x32xf32>
    %131 = arith.subf %125, %76 : vector<4x32xf32>
    %132 = arith.mulf %78, %131 : vector<4x32xf32>
    %133 = arith.addf %76, %132 : vector<4x32xf32>
    %134 = vector.extract_strided_slice %5 {offsets = [2, 0, 0], sizes = [1, 4, 32], strides = [1, 1, 1]} : vector<8x4x32xf32> to vector<1x4x32xf32>
    %135 = vector.shape_cast %134 : vector<1x4x32xf32> to vector<4x32xf32>
    %136 = vector.extract_strided_slice %9 {offsets = [8, 0], sizes = [4, 128], strides = [1, 1]} : vector<32x128xf32> to vector<4x128xf32>
    %cst_34 = arith.constant dense<0.000000e+00> : vector<4x128xf32>
    %137 = tpu.matmul %102, %1, %cst_34 {dimension_numbers = #tpu.dot_dimension_numbers<[1], [0], [0], [1], [0, 0, 1, 1], [], []>} : vector<4x32xf32>, vector<32x128xf32>, vector<4x128xf32> -> vector<4x128xf32>
    %138 = arith.addf %136, %137 : vector<4x128xf32>
    %139 = math.tanh %138 : vector<4x128xf32>
    %cst_35 = arith.constant 5.000000e-01 : f32
    %140 = vector.broadcast %cst_35 : f32 to vector<4x128xf32>
    %141 = arith.mulf %140, %138 : vector<4x128xf32>
    %142 = math.tanh %141 : vector<4x128xf32>
    %cst_36 = arith.constant 5.000000e-01 : f32
    %143 = vector.broadcast %cst_36 : f32 to vector<4x128xf32>
    %144 = arith.mulf %143, %142 : vector<4x128xf32>
    %cst_37 = arith.constant 5.000000e-01 : f32
    %145 = vector.broadcast %cst_37 : f32 to vector<4x128xf32>
    %146 = arith.addf %144, %145 : vector<4x128xf32>
    %147 = arith.select %15, %139, %146 : vector<4x128xi1>, vector<4x128xf32>
    %148 = vector.extract_strided_slice %147 {offsets = [0, 0], sizes = [4, 32], strides = [1, 1]} : vector<4x128xf32> to vector<4x32xf32>
    %149 = vector.extract_strided_slice %147 {offsets = [0, 32], sizes = [4, 32], strides = [1, 1]} : vector<4x128xf32> to vector<4x32xf32>
    %150 = vector.extract_strided_slice %147 {offsets = [0, 64], sizes = [4, 32], strides = [1, 1]} : vector<4x128xf32> to vector<4x32xf32>
    %151 = vector.extract_strided_slice %147 {offsets = [0, 96], sizes = [4, 32], strides = [1, 1]} : vector<4x128xf32> to vector<4x32xf32>
    %152 = arith.mulf %149, %105 : vector<4x32xf32>
    %153 = arith.mulf %148, %150 : vector<4x32xf32>
    %154 = arith.addf %152, %153 : vector<4x32xf32>
    %155 = math.tanh %154 : vector<4x32xf32>
    %156 = arith.mulf %151, %155 : vector<4x32xf32>
    %157 = arith.subf %156, %102 : vector<4x32xf32>
    %158 = arith.mulf %135, %157 : vector<4x32xf32>
    %159 = arith.addf %102, %158 : vector<4x32xf32>
    %160 = arith.subf %154, %105 : vector<4x32xf32>
    %161 = arith.mulf %135, %160 : vector<4x32xf32>
    %162 = arith.addf %105, %161 : vector<4x32xf32>
    %163 = tpu.concatenate %159, %130 in 1 : vector<4x32xf32>, vector<4x32xf32> -> vector<4x64xf32>
    %cst_38 = arith.constant dense<0.000000e+00> : vector<4x128xf32>
    %164 = tpu.matmul %163, %3, %cst_38 {dimension_numbers = #tpu.dot_dimension_numbers<[1], [0], [0], [1], [0, 0, 1, 1], [], []>} : vector<4x64xf32>, vector<64x128xf32>, vector<4x128xf32> -> vector<4x128xf32>
    %165 = vector.broadcast %4 : vector<1x128xf32> to vector<4x128xf32>
    %166 = arith.addf %164, %165 : vector<4x128xf32>
    %167 = math.tanh %166 : vector<4x128xf32>
    %cst_39 = arith.constant 5.000000e-01 : f32
    %168 = vector.broadcast %cst_39 : f32 to vector<4x128xf32>
    %169 = arith.mulf %168, %166 : vector<4x128xf32>
    %170 = math.tanh %169 : vector<4x128xf32>
    %cst_40 = arith.constant 5.000000e-01 : f32
    %171 = vector.broadcast %cst_40 : f32 to vector<4x128xf32>
    %172 = arith.mulf %171, %170 : vector<4x128xf32>
    %cst_41 = arith.constant 5.000000e-01 : f32
    %173 = vector.broadcast %cst_41 : f32 to vector<4x128xf32>
    %174 = arith.addf %172, %173 : vector<4x128xf32>
    %175 = arith.select %15, %167, %174 : vector<4x128xi1>, vector<4x128xf32>
    %176 = vector.extract_strided_slice %175 {offsets = [0, 0], sizes = [4, 32], strides = [1, 1]} : vector<4x128xf32> to vector<4x32xf32>
    %177 = vector.extract_strided_slice %175 {offsets = [0, 32], sizes = [4, 32], strides = [1, 1]} : vector<4x128xf32> to vector<4x32xf32>
    %178 = vector.extract_strided_slice %175 {offsets = [0, 64], sizes = [4, 32], strides = [1, 1]} : vector<4x128xf32> to vector<4x32xf32>
    %179 = vector.extract_strided_slice %175 {offsets = [0, 96], sizes = [4, 32], strides = [1, 1]} : vector<4x128xf32> to vector<4x32xf32>
    %180 = arith.mulf %177, %133 : vector<4x32xf32>
    %181 = arith.mulf %176, %178 : vector<4x32xf32>
    %182 = arith.addf %180, %181 : vector<4x32xf32>
    %183 = math.tanh %182 : vector<4x32xf32>
    %184 = arith.mulf %179, %183 : vector<4x32xf32>
    %185 = arith.subf %184, %130 : vector<4x32xf32>
    %186 = arith.mulf %135, %185 : vector<4x32xf32>
    %187 = arith.addf %130, %186 : vector<4x32xf32>
    %188 = arith.subf %182, %133 : vector<4x32xf32>
    %189 = arith.mulf %135, %188 : vector<4x32xf32>
    %190 = arith.addf %133, %189 : vector<4x32xf32>
    %191 = vector.extract_strided_slice %5 {offsets = [3, 0, 0], sizes = [1, 4, 32], strides = [1, 1, 1]} : vector<8x4x32xf32> to vector<1x4x32xf32>
    %192 = vector.shape_cast %191 : vector<1x4x32xf32> to vector<4x32xf32>
    %193 = vector.extract_strided_slice %9 {offsets = [12, 0], sizes = [4, 128], strides = [1, 1]} : vector<32x128xf32> to vector<4x128xf32>
    %cst_42 = arith.constant dense<0.000000e+00> : vector<4x128xf32>
    %194 = tpu.matmul %159, %1, %cst_42 {dimension_numbers = #tpu.dot_dimension_numbers<[1], [0], [0], [1], [0, 0, 1, 1], [], []>} : vector<4x32xf32>, vector<32x128xf32>, vector<4x128xf32> -> vector<4x128xf32>
    %195 = arith.addf %193, %194 : vector<4x128xf32>
    %196 = math.tanh %195 : vector<4x128xf32>
    %cst_43 = arith.constant 5.000000e-01 : f32
    %197 = vector.broadcast %cst_43 : f32 to vector<4x128xf32>
    %198 = arith.mulf %197, %195 : vector<4x128xf32>
    %199 = math.tanh %198 : vector<4x128xf32>
    %cst_44 = arith.constant 5.000000e-01 : f32
    %200 = vector.broadcast %cst_44 : f32 to vector<4x128xf32>
    %201 = arith.mulf %200, %199 : vector<4x128xf32>
    %cst_45 = arith.constant 5.000000e-01 : f32
    %202 = vector.broadcast %cst_45 : f32 to vector<4x128xf32>
    %203 = arith.addf %201, %202 : vector<4x128xf32>
    %204 = arith.select %15, %196, %203 : vector<4x128xi1>, vector<4x128xf32>
    %205 = vector.extract_strided_slice %204 {offsets = [0, 0], sizes = [4, 32], strides = [1, 1]} : vector<4x128xf32> to vector<4x32xf32>
    %206 = vector.extract_strided_slice %204 {offsets = [0, 32], sizes = [4, 32], strides = [1, 1]} : vector<4x128xf32> to vector<4x32xf32>
    %207 = vector.extract_strided_slice %204 {offsets = [0, 64], sizes = [4, 32], strides = [1, 1]} : vector<4x128xf32> to vector<4x32xf32>
    %208 = vector.extract_strided_slice %204 {offsets = [0, 96], sizes = [4, 32], strides = [1, 1]} : vector<4x128xf32> to vector<4x32xf32>
    %209 = arith.mulf %206, %162 : vector<4x32xf32>
    %210 = arith.mulf %205, %207 : vector<4x32xf32>
    %211 = arith.addf %209, %210 : vector<4x32xf32>
    %212 = math.tanh %211 : vector<4x32xf32>
    %213 = arith.mulf %208, %212 : vector<4x32xf32>
    %214 = arith.subf %213, %159 : vector<4x32xf32>
    %215 = arith.mulf %192, %214 : vector<4x32xf32>
    %216 = arith.addf %159, %215 : vector<4x32xf32>
    %217 = arith.subf %211, %162 : vector<4x32xf32>
    %218 = arith.mulf %192, %217 : vector<4x32xf32>
    %219 = arith.addf %162, %218 : vector<4x32xf32>
    %220 = tpu.concatenate %216, %187 in 1 : vector<4x32xf32>, vector<4x32xf32> -> vector<4x64xf32>
    %cst_46 = arith.constant dense<0.000000e+00> : vector<4x128xf32>
    %221 = tpu.matmul %220, %3, %cst_46 {dimension_numbers = #tpu.dot_dimension_numbers<[1], [0], [0], [1], [0, 0, 1, 1], [], []>} : vector<4x64xf32>, vector<64x128xf32>, vector<4x128xf32> -> vector<4x128xf32>
    %222 = vector.broadcast %4 : vector<1x128xf32> to vector<4x128xf32>
    %223 = arith.addf %221, %222 : vector<4x128xf32>
    %224 = math.tanh %223 : vector<4x128xf32>
    %cst_47 = arith.constant 5.000000e-01 : f32
    %225 = vector.broadcast %cst_47 : f32 to vector<4x128xf32>
    %226 = arith.mulf %225, %223 : vector<4x128xf32>
    %227 = math.tanh %226 : vector<4x128xf32>
    %cst_48 = arith.constant 5.000000e-01 : f32
    %228 = vector.broadcast %cst_48 : f32 to vector<4x128xf32>
    %229 = arith.mulf %228, %227 : vector<4x128xf32>
    %cst_49 = arith.constant 5.000000e-01 : f32
    %230 = vector.broadcast %cst_49 : f32 to vector<4x128xf32>
    %231 = arith.addf %229, %230 : vector<4x128xf32>
    %232 = arith.select %15, %224, %231 : vector<4x128xi1>, vector<4x128xf32>
    %233 = vector.extract_strided_slice %232 {offsets = [0, 0], sizes = [4, 32], strides = [1, 1]} : vector<4x128xf32> to vector<4x32xf32>
    %234 = vector.extract_strided_slice %232 {offsets = [0, 32], sizes = [4, 32], strides = [1, 1]} : vector<4x128xf32> to vector<4x32xf32>
    %235 = vector.extract_strided_slice %232 {offsets = [0, 64], sizes = [4, 32], strides = [1, 1]} : vector<4x128xf32> to vector<4x32xf32>
    %236 = vector.extract_strided_slice %232 {offsets = [0, 96], sizes = [4, 32], strides = [1, 1]} : vector<4x128xf32> to vector<4x32xf32>
    %237 = arith.mulf %234, %190 : vector<4x32xf32>
    %238 = arith.mulf %233, %235 : vector<4x32xf32>
    %239 = arith.addf %237, %238 : vector<4x32xf32>
    %240 = math.tanh %239 : vector<4x32xf32>
    %241 = arith.mulf %236, %240 : vector<4x32xf32>
    %242 = arith.subf %241, %187 : vector<4x32xf32>
    %243 = arith.mulf %192, %242 : vector<4x32xf32>
    %244 = arith.addf %187, %243 : vector<4x32xf32>
    %245 = arith.subf %239, %190 : vector<4x32xf32>
    %246 = arith.mulf %192, %245 : vector<4x32xf32>
    %247 = arith.addf %190, %246 : vector<4x32xf32>
    %248 = vector.extract_strided_slice %5 {offsets = [4, 0, 0], sizes = [1, 4, 32], strides = [1, 1, 1]} : vector<8x4x32xf32> to vector<1x4x32xf32>
    %249 = vector.shape_cast %248 : vector<1x4x32xf32> to vector<4x32xf32>
    %250 = vector.extract_strided_slice %9 {offsets = [16, 0], sizes = [4, 128], strides = [1, 1]} : vector<32x128xf32> to vector<4x128xf32>
    %cst_50 = arith.constant dense<0.000000e+00> : vector<4x128xf32>
    %251 = tpu.matmul %216, %1, %cst_50 {dimension_numbers = #tpu.dot_dimension_numbers<[1], [0], [0], [1], [0, 0, 1, 1], [], []>} : vector<4x32xf32>, vector<32x128xf32>, vector<4x128xf32> -> vector<4x128xf32>
    %252 = arith.addf %250, %251 : vector<4x128xf32>
    %253 = math.tanh %252 : vector<4x128xf32>
    %cst_51 = arith.constant 5.000000e-01 : f32
    %254 = vector.broadcast %cst_51 : f32 to vector<4x128xf32>
    %255 = arith.mulf %254, %252 : vector<4x128xf32>
    %256 = math.tanh %255 : vector<4x128xf32>
    %cst_52 = arith.constant 5.000000e-01 : f32
    %257 = vector.broadcast %cst_52 : f32 to vector<4x128xf32>
    %258 = arith.mulf %257, %256 : vector<4x128xf32>
    %cst_53 = arith.constant 5.000000e-01 : f32
    %259 = vector.broadcast %cst_53 : f32 to vector<4x128xf32>
    %260 = arith.addf %258, %259 : vector<4x128xf32>
    %261 = arith.select %15, %253, %260 : vector<4x128xi1>, vector<4x128xf32>
    %262 = vector.extract_strided_slice %261 {offsets = [0, 0], sizes = [4, 32], strides = [1, 1]} : vector<4x128xf32> to vector<4x32xf32>
    %263 = vector.extract_strided_slice %261 {offsets = [0, 32], sizes = [4, 32], strides = [1, 1]} : vector<4x128xf32> to vector<4x32xf32>
    %264 = vector.extract_strided_slice %261 {offsets = [0, 64], sizes = [4, 32], strides = [1, 1]} : vector<4x128xf32> to vector<4x32xf32>
    %265 = vector.extract_strided_slice %261 {offsets = [0, 96], sizes = [4, 32], strides = [1, 1]} : vector<4x128xf32> to vector<4x32xf32>
    %266 = arith.mulf %263, %219 : vector<4x32xf32>
    %267 = arith.mulf %262, %264 : vector<4x32xf32>
    %268 = arith.addf %266, %267 : vector<4x32xf32>
    %269 = math.tanh %268 : vector<4x32xf32>
    %270 = arith.mulf %265, %269 : vector<4x32xf32>
    %271 = arith.subf %270, %216 : vector<4x32xf32>
    %272 = arith.mulf %249, %271 : vector<4x32xf32>
    %273 = arith.addf %216, %272 : vector<4x32xf32>
    %274 = arith.subf %268, %219 : vector<4x32xf32>
    %275 = arith.mulf %249, %274 : vector<4x32xf32>
    %276 = arith.addf %219, %275 : vector<4x32xf32>
    %277 = tpu.concatenate %273, %244 in 1 : vector<4x32xf32>, vector<4x32xf32> -> vector<4x64xf32>
    %cst_54 = arith.constant dense<0.000000e+00> : vector<4x128xf32>
    %278 = tpu.matmul %277, %3, %cst_54 {dimension_numbers = #tpu.dot_dimension_numbers<[1], [0], [0], [1], [0, 0, 1, 1], [], []>} : vector<4x64xf32>, vector<64x128xf32>, vector<4x128xf32> -> vector<4x128xf32>
    %279 = vector.broadcast %4 : vector<1x128xf32> to vector<4x128xf32>
    %280 = arith.addf %278, %279 : vector<4x128xf32>
    %281 = math.tanh %280 : vector<4x128xf32>
    %cst_55 = arith.constant 5.000000e-01 : f32
    %282 = vector.broadcast %cst_55 : f32 to vector<4x128xf32>
    %283 = arith.mulf %282, %280 : vector<4x128xf32>
    %284 = math.tanh %283 : vector<4x128xf32>
    %cst_56 = arith.constant 5.000000e-01 : f32
    %285 = vector.broadcast %cst_56 : f32 to vector<4x128xf32>
    %286 = arith.mulf %285, %284 : vector<4x128xf32>
    %cst_57 = arith.constant 5.000000e-01 : f32
    %287 = vector.broadcast %cst_57 : f32 to vector<4x128xf32>
    %288 = arith.addf %286, %287 : vector<4x128xf32>
    %289 = arith.select %15, %281, %288 : vector<4x128xi1>, vector<4x128xf32>
    %290 = vector.extract_strided_slice %289 {offsets = [0, 0], sizes = [4, 32], strides = [1, 1]} : vector<4x128xf32> to vector<4x32xf32>
    %291 = vector.extract_strided_slice %289 {offsets = [0, 32], sizes = [4, 32], strides = [1, 1]} : vector<4x128xf32> to vector<4x32xf32>
    %292 = vector.extract_strided_slice %289 {offsets = [0, 64], sizes = [4, 32], strides = [1, 1]} : vector<4x128xf32> to vector<4x32xf32>
    %293 = vector.extract_strided_slice %289 {offsets = [0, 96], sizes = [4, 32], strides = [1, 1]} : vector<4x128xf32> to vector<4x32xf32>
    %294 = arith.mulf %291, %247 : vector<4x32xf32>
    %295 = arith.mulf %290, %292 : vector<4x32xf32>
    %296 = arith.addf %294, %295 : vector<4x32xf32>
    %297 = math.tanh %296 : vector<4x32xf32>
    %298 = arith.mulf %293, %297 : vector<4x32xf32>
    %299 = arith.subf %298, %244 : vector<4x32xf32>
    %300 = arith.mulf %249, %299 : vector<4x32xf32>
    %301 = arith.addf %244, %300 : vector<4x32xf32>
    %302 = arith.subf %296, %247 : vector<4x32xf32>
    %303 = arith.mulf %249, %302 : vector<4x32xf32>
    %304 = arith.addf %247, %303 : vector<4x32xf32>
    %305 = vector.extract_strided_slice %5 {offsets = [5, 0, 0], sizes = [1, 4, 32], strides = [1, 1, 1]} : vector<8x4x32xf32> to vector<1x4x32xf32>
    %306 = vector.shape_cast %305 : vector<1x4x32xf32> to vector<4x32xf32>
    %307 = vector.extract_strided_slice %9 {offsets = [20, 0], sizes = [4, 128], strides = [1, 1]} : vector<32x128xf32> to vector<4x128xf32>
    %cst_58 = arith.constant dense<0.000000e+00> : vector<4x128xf32>
    %308 = tpu.matmul %273, %1, %cst_58 {dimension_numbers = #tpu.dot_dimension_numbers<[1], [0], [0], [1], [0, 0, 1, 1], [], []>} : vector<4x32xf32>, vector<32x128xf32>, vector<4x128xf32> -> vector<4x128xf32>
    %309 = arith.addf %307, %308 : vector<4x128xf32>
    %310 = math.tanh %309 : vector<4x128xf32>
    %cst_59 = arith.constant 5.000000e-01 : f32
    %311 = vector.broadcast %cst_59 : f32 to vector<4x128xf32>
    %312 = arith.mulf %311, %309 : vector<4x128xf32>
    %313 = math.tanh %312 : vector<4x128xf32>
    %cst_60 = arith.constant 5.000000e-01 : f32
    %314 = vector.broadcast %cst_60 : f32 to vector<4x128xf32>
    %315 = arith.mulf %314, %313 : vector<4x128xf32>
    %cst_61 = arith.constant 5.000000e-01 : f32
    %316 = vector.broadcast %cst_61 : f32 to vector<4x128xf32>
    %317 = arith.addf %315, %316 : vector<4x128xf32>
    %318 = arith.select %15, %310, %317 : vector<4x128xi1>, vector<4x128xf32>
    %319 = vector.extract_strided_slice %318 {offsets = [0, 0], sizes = [4, 32], strides = [1, 1]} : vector<4x128xf32> to vector<4x32xf32>
    %320 = vector.extract_strided_slice %318 {offsets = [0, 32], sizes = [4, 32], strides = [1, 1]} : vector<4x128xf32> to vector<4x32xf32>
    %321 = vector.extract_strided_slice %318 {offsets = [0, 64], sizes = [4, 32], strides = [1, 1]} : vector<4x128xf32> to vector<4x32xf32>
    %322 = vector.extract_strided_slice %318 {offsets = [0, 96], sizes = [4, 32], strides = [1, 1]} : vector<4x128xf32> to vector<4x32xf32>
    %323 = arith.mulf %320, %276 : vector<4x32xf32>
    %324 = arith.mulf %319, %321 : vector<4x32xf32>
    %325 = arith.addf %323, %324 : vector<4x32xf32>
    %326 = math.tanh %325 : vector<4x32xf32>
    %327 = arith.mulf %322, %326 : vector<4x32xf32>
    %328 = arith.subf %327, %273 : vector<4x32xf32>
    %329 = arith.mulf %306, %328 : vector<4x32xf32>
    %330 = arith.addf %273, %329 : vector<4x32xf32>
    %331 = arith.subf %325, %276 : vector<4x32xf32>
    %332 = arith.mulf %306, %331 : vector<4x32xf32>
    %333 = arith.addf %276, %332 : vector<4x32xf32>
    %334 = tpu.concatenate %330, %301 in 1 : vector<4x32xf32>, vector<4x32xf32> -> vector<4x64xf32>
    %cst_62 = arith.constant dense<0.000000e+00> : vector<4x128xf32>
    %335 = tpu.matmul %334, %3, %cst_62 {dimension_numbers = #tpu.dot_dimension_numbers<[1], [0], [0], [1], [0, 0, 1, 1], [], []>} : vector<4x64xf32>, vector<64x128xf32>, vector<4x128xf32> -> vector<4x128xf32>
    %336 = vector.broadcast %4 : vector<1x128xf32> to vector<4x128xf32>
    %337 = arith.addf %335, %336 : vector<4x128xf32>
    %338 = math.tanh %337 : vector<4x128xf32>
    %cst_63 = arith.constant 5.000000e-01 : f32
    %339 = vector.broadcast %cst_63 : f32 to vector<4x128xf32>
    %340 = arith.mulf %339, %337 : vector<4x128xf32>
    %341 = math.tanh %340 : vector<4x128xf32>
    %cst_64 = arith.constant 5.000000e-01 : f32
    %342 = vector.broadcast %cst_64 : f32 to vector<4x128xf32>
    %343 = arith.mulf %342, %341 : vector<4x128xf32>
    %cst_65 = arith.constant 5.000000e-01 : f32
    %344 = vector.broadcast %cst_65 : f32 to vector<4x128xf32>
    %345 = arith.addf %343, %344 : vector<4x128xf32>
    %346 = arith.select %15, %338, %345 : vector<4x128xi1>, vector<4x128xf32>
    %347 = vector.extract_strided_slice %346 {offsets = [0, 0], sizes = [4, 32], strides = [1, 1]} : vector<4x128xf32> to vector<4x32xf32>
    %348 = vector.extract_strided_slice %346 {offsets = [0, 32], sizes = [4, 32], strides = [1, 1]} : vector<4x128xf32> to vector<4x32xf32>
    %349 = vector.extract_strided_slice %346 {offsets = [0, 64], sizes = [4, 32], strides = [1, 1]} : vector<4x128xf32> to vector<4x32xf32>
    %350 = vector.extract_strided_slice %346 {offsets = [0, 96], sizes = [4, 32], strides = [1, 1]} : vector<4x128xf32> to vector<4x32xf32>
    %351 = arith.mulf %348, %304 : vector<4x32xf32>
    %352 = arith.mulf %347, %349 : vector<4x32xf32>
    %353 = arith.addf %351, %352 : vector<4x32xf32>
    %354 = math.tanh %353 : vector<4x32xf32>
    %355 = arith.mulf %350, %354 : vector<4x32xf32>
    %356 = arith.subf %355, %301 : vector<4x32xf32>
    %357 = arith.mulf %306, %356 : vector<4x32xf32>
    %358 = arith.addf %301, %357 : vector<4x32xf32>
    %359 = arith.subf %353, %304 : vector<4x32xf32>
    %360 = arith.mulf %306, %359 : vector<4x32xf32>
    %361 = arith.addf %304, %360 : vector<4x32xf32>
    %362 = vector.extract_strided_slice %5 {offsets = [6, 0, 0], sizes = [1, 4, 32], strides = [1, 1, 1]} : vector<8x4x32xf32> to vector<1x4x32xf32>
    %363 = vector.shape_cast %362 : vector<1x4x32xf32> to vector<4x32xf32>
    %364 = vector.extract_strided_slice %9 {offsets = [24, 0], sizes = [4, 128], strides = [1, 1]} : vector<32x128xf32> to vector<4x128xf32>
    %cst_66 = arith.constant dense<0.000000e+00> : vector<4x128xf32>
    %365 = tpu.matmul %330, %1, %cst_66 {dimension_numbers = #tpu.dot_dimension_numbers<[1], [0], [0], [1], [0, 0, 1, 1], [], []>} : vector<4x32xf32>, vector<32x128xf32>, vector<4x128xf32> -> vector<4x128xf32>
    %366 = arith.addf %364, %365 : vector<4x128xf32>
    %367 = math.tanh %366 : vector<4x128xf32>
    %cst_67 = arith.constant 5.000000e-01 : f32
    %368 = vector.broadcast %cst_67 : f32 to vector<4x128xf32>
    %369 = arith.mulf %368, %366 : vector<4x128xf32>
    %370 = math.tanh %369 : vector<4x128xf32>
    %cst_68 = arith.constant 5.000000e-01 : f32
    %371 = vector.broadcast %cst_68 : f32 to vector<4x128xf32>
    %372 = arith.mulf %371, %370 : vector<4x128xf32>
    %cst_69 = arith.constant 5.000000e-01 : f32
    %373 = vector.broadcast %cst_69 : f32 to vector<4x128xf32>
    %374 = arith.addf %372, %373 : vector<4x128xf32>
    %375 = arith.select %15, %367, %374 : vector<4x128xi1>, vector<4x128xf32>
    %376 = vector.extract_strided_slice %375 {offsets = [0, 0], sizes = [4, 32], strides = [1, 1]} : vector<4x128xf32> to vector<4x32xf32>
    %377 = vector.extract_strided_slice %375 {offsets = [0, 32], sizes = [4, 32], strides = [1, 1]} : vector<4x128xf32> to vector<4x32xf32>
    %378 = vector.extract_strided_slice %375 {offsets = [0, 64], sizes = [4, 32], strides = [1, 1]} : vector<4x128xf32> to vector<4x32xf32>
    %379 = vector.extract_strided_slice %375 {offsets = [0, 96], sizes = [4, 32], strides = [1, 1]} : vector<4x128xf32> to vector<4x32xf32>
    %380 = arith.mulf %377, %333 : vector<4x32xf32>
    %381 = arith.mulf %376, %378 : vector<4x32xf32>
    %382 = arith.addf %380, %381 : vector<4x32xf32>
    %383 = math.tanh %382 : vector<4x32xf32>
    %384 = arith.mulf %379, %383 : vector<4x32xf32>
    %385 = arith.subf %384, %330 : vector<4x32xf32>
    %386 = arith.mulf %363, %385 : vector<4x32xf32>
    %387 = arith.addf %330, %386 : vector<4x32xf32>
    %388 = arith.subf %382, %333 : vector<4x32xf32>
    %389 = arith.mulf %363, %388 : vector<4x32xf32>
    %390 = arith.addf %333, %389 : vector<4x32xf32>
    %391 = tpu.concatenate %387, %358 in 1 : vector<4x32xf32>, vector<4x32xf32> -> vector<4x64xf32>
    %cst_70 = arith.constant dense<0.000000e+00> : vector<4x128xf32>
    %392 = tpu.matmul %391, %3, %cst_70 {dimension_numbers = #tpu.dot_dimension_numbers<[1], [0], [0], [1], [0, 0, 1, 1], [], []>} : vector<4x64xf32>, vector<64x128xf32>, vector<4x128xf32> -> vector<4x128xf32>
    %393 = vector.broadcast %4 : vector<1x128xf32> to vector<4x128xf32>
    %394 = arith.addf %392, %393 : vector<4x128xf32>
    %395 = math.tanh %394 : vector<4x128xf32>
    %cst_71 = arith.constant 5.000000e-01 : f32
    %396 = vector.broadcast %cst_71 : f32 to vector<4x128xf32>
    %397 = arith.mulf %396, %394 : vector<4x128xf32>
    %398 = math.tanh %397 : vector<4x128xf32>
    %cst_72 = arith.constant 5.000000e-01 : f32
    %399 = vector.broadcast %cst_72 : f32 to vector<4x128xf32>
    %400 = arith.mulf %399, %398 : vector<4x128xf32>
    %cst_73 = arith.constant 5.000000e-01 : f32
    %401 = vector.broadcast %cst_73 : f32 to vector<4x128xf32>
    %402 = arith.addf %400, %401 : vector<4x128xf32>
    %403 = arith.select %15, %395, %402 : vector<4x128xi1>, vector<4x128xf32>
    %404 = vector.extract_strided_slice %403 {offsets = [0, 0], sizes = [4, 32], strides = [1, 1]} : vector<4x128xf32> to vector<4x32xf32>
    %405 = vector.extract_strided_slice %403 {offsets = [0, 32], sizes = [4, 32], strides = [1, 1]} : vector<4x128xf32> to vector<4x32xf32>
    %406 = vector.extract_strided_slice %403 {offsets = [0, 64], sizes = [4, 32], strides = [1, 1]} : vector<4x128xf32> to vector<4x32xf32>
    %407 = vector.extract_strided_slice %403 {offsets = [0, 96], sizes = [4, 32], strides = [1, 1]} : vector<4x128xf32> to vector<4x32xf32>
    %408 = arith.mulf %405, %361 : vector<4x32xf32>
    %409 = arith.mulf %404, %406 : vector<4x32xf32>
    %410 = arith.addf %408, %409 : vector<4x32xf32>
    %411 = math.tanh %410 : vector<4x32xf32>
    %412 = arith.mulf %407, %411 : vector<4x32xf32>
    %413 = arith.subf %412, %358 : vector<4x32xf32>
    %414 = arith.mulf %363, %413 : vector<4x32xf32>
    %415 = arith.addf %358, %414 : vector<4x32xf32>
    %416 = arith.subf %410, %361 : vector<4x32xf32>
    %417 = arith.mulf %363, %416 : vector<4x32xf32>
    %418 = arith.addf %361, %417 : vector<4x32xf32>
    %419 = vector.extract_strided_slice %5 {offsets = [7, 0, 0], sizes = [1, 4, 32], strides = [1, 1, 1]} : vector<8x4x32xf32> to vector<1x4x32xf32>
    %420 = vector.shape_cast %419 : vector<1x4x32xf32> to vector<4x32xf32>
    %421 = vector.extract_strided_slice %9 {offsets = [28, 0], sizes = [4, 128], strides = [1, 1]} : vector<32x128xf32> to vector<4x128xf32>
    %cst_74 = arith.constant dense<0.000000e+00> : vector<4x128xf32>
    %422 = tpu.matmul %387, %1, %cst_74 {dimension_numbers = #tpu.dot_dimension_numbers<[1], [0], [0], [1], [0, 0, 1, 1], [], []>} : vector<4x32xf32>, vector<32x128xf32>, vector<4x128xf32> -> vector<4x128xf32>
    %423 = arith.addf %421, %422 : vector<4x128xf32>
    %424 = math.tanh %423 : vector<4x128xf32>
    %cst_75 = arith.constant 5.000000e-01 : f32
    %425 = vector.broadcast %cst_75 : f32 to vector<4x128xf32>
    %426 = arith.mulf %425, %423 : vector<4x128xf32>
    %427 = math.tanh %426 : vector<4x128xf32>
    %cst_76 = arith.constant 5.000000e-01 : f32
    %428 = vector.broadcast %cst_76 : f32 to vector<4x128xf32>
    %429 = arith.mulf %428, %427 : vector<4x128xf32>
    %cst_77 = arith.constant 5.000000e-01 : f32
    %430 = vector.broadcast %cst_77 : f32 to vector<4x128xf32>
    %431 = arith.addf %429, %430 : vector<4x128xf32>
    %432 = arith.select %15, %424, %431 : vector<4x128xi1>, vector<4x128xf32>
    %433 = vector.extract_strided_slice %432 {offsets = [0, 0], sizes = [4, 32], strides = [1, 1]} : vector<4x128xf32> to vector<4x32xf32>
    %434 = vector.extract_strided_slice %432 {offsets = [0, 32], sizes = [4, 32], strides = [1, 1]} : vector<4x128xf32> to vector<4x32xf32>
    %435 = vector.extract_strided_slice %432 {offsets = [0, 64], sizes = [4, 32], strides = [1, 1]} : vector<4x128xf32> to vector<4x32xf32>
    %436 = vector.extract_strided_slice %432 {offsets = [0, 96], sizes = [4, 32], strides = [1, 1]} : vector<4x128xf32> to vector<4x32xf32>
    %437 = arith.mulf %434, %390 : vector<4x32xf32>
    %438 = arith.mulf %433, %435 : vector<4x32xf32>
    %439 = arith.addf %437, %438 : vector<4x32xf32>
    %440 = math.tanh %439 : vector<4x32xf32>
    %441 = arith.mulf %436, %440 : vector<4x32xf32>
    %442 = arith.subf %441, %387 : vector<4x32xf32>
    %443 = arith.mulf %420, %442 : vector<4x32xf32>
    %444 = arith.addf %387, %443 : vector<4x32xf32>
    %445 = tpu.concatenate %444, %415 in 1 : vector<4x32xf32>, vector<4x32xf32> -> vector<4x64xf32>
    %cst_78 = arith.constant dense<0.000000e+00> : vector<4x128xf32>
    %446 = tpu.matmul %445, %3, %cst_78 {dimension_numbers = #tpu.dot_dimension_numbers<[1], [0], [0], [1], [0, 0, 1, 1], [], []>} : vector<4x64xf32>, vector<64x128xf32>, vector<4x128xf32> -> vector<4x128xf32>
    %447 = vector.broadcast %4 : vector<1x128xf32> to vector<4x128xf32>
    %448 = arith.addf %446, %447 : vector<4x128xf32>
    %449 = math.tanh %448 : vector<4x128xf32>
    %cst_79 = arith.constant 5.000000e-01 : f32
    %450 = vector.broadcast %cst_79 : f32 to vector<4x128xf32>
    %451 = arith.mulf %450, %448 : vector<4x128xf32>
    %452 = math.tanh %451 : vector<4x128xf32>
    %cst_80 = arith.constant 5.000000e-01 : f32
    %453 = vector.broadcast %cst_80 : f32 to vector<4x128xf32>
    %454 = arith.mulf %453, %452 : vector<4x128xf32>
    %cst_81 = arith.constant 5.000000e-01 : f32
    %455 = vector.broadcast %cst_81 : f32 to vector<4x128xf32>
    %456 = arith.addf %454, %455 : vector<4x128xf32>
    %457 = arith.select %15, %449, %456 : vector<4x128xi1>, vector<4x128xf32>
    %458 = vector.extract_strided_slice %457 {offsets = [0, 0], sizes = [4, 32], strides = [1, 1]} : vector<4x128xf32> to vector<4x32xf32>
    %459 = vector.extract_strided_slice %457 {offsets = [0, 32], sizes = [4, 32], strides = [1, 1]} : vector<4x128xf32> to vector<4x32xf32>
    %460 = vector.extract_strided_slice %457 {offsets = [0, 64], sizes = [4, 32], strides = [1, 1]} : vector<4x128xf32> to vector<4x32xf32>
    %461 = vector.extract_strided_slice %457 {offsets = [0, 96], sizes = [4, 32], strides = [1, 1]} : vector<4x128xf32> to vector<4x32xf32>
    %462 = arith.mulf %459, %418 : vector<4x32xf32>
    %463 = arith.mulf %458, %460 : vector<4x32xf32>
    %464 = arith.addf %462, %463 : vector<4x32xf32>
    %465 = math.tanh %464 : vector<4x32xf32>
    %466 = arith.mulf %461, %465 : vector<4x32xf32>
    %467 = arith.subf %466, %415 : vector<4x32xf32>
    %468 = arith.mulf %420, %467 : vector<4x32xf32>
    %469 = arith.addf %415, %468 : vector<4x32xf32>
    %c0_82 = arith.constant 0 : index
    %c0_83 = arith.constant 0 : index
    %470 = vector.load %arg7[%c0_82, %c0_83] : memref<32x32xf32, #tpu.memory_space<vmem>>, vector<32x32xf32>
    %cst_84 = arith.constant dense<0.000000e+00> : vector<4x32xf32>
    %471 = tpu.matmul %469, %470, %cst_84 {dimension_numbers = #tpu.dot_dimension_numbers<[1], [0], [0], [1], [0, 0, 1, 1], [], []>} : vector<4x32xf32>, vector<32x32xf32>, vector<4x32xf32> -> vector<4x32xf32>
    %c0_85 = arith.constant 0 : index
    %c0_86 = arith.constant 0 : index
    %472 = vector.load %arg8[%c0_85, %c0_86] : memref<1x32xf32, #tpu.memory_space<vmem>>, vector<1x32xf32>
    %473 = vector.broadcast %472 : vector<1x32xf32> to vector<4x32xf32>
    %474 = arith.addf %471, %473 : vector<4x32xf32>
    %cst_87 = arith.constant 5.000000e-01 : f32
    %475 = vector.broadcast %cst_87 : f32 to vector<4x32xf32>
    %476 = arith.mulf %475, %474 : vector<4x32xf32>
    %cst_88 = arith.constant 0.707106769 : f32
    %477 = vector.broadcast %cst_88 : f32 to vector<4x32xf32>
    %478 = arith.mulf %474, %477 : vector<4x32xf32>
    %cst_89 = arith.constant 0.000000e+00 : f32
    %479 = vector.broadcast %cst_89 : f32 to vector<4x32xf32>
    %480 = arith.cmpf oge, %478, %479 : vector<4x32xf32>
    %cst_90 = arith.constant 1.000000e+00 : f32
    %cst_91 = arith.constant -1.000000e+00 : f32
    %481 = vector.broadcast %cst_90 : f32 to vector<4x32xf32>
    %482 = vector.broadcast %cst_91 : f32 to vector<4x32xf32>
    %483 = arith.select %480, %481, %482 : vector<4x32xi1>, vector<4x32xf32>
    %484 = math.absf %478 : vector<4x32xf32>
    %cst_92 = arith.constant 0.327591091 : f32
    %485 = vector.broadcast %cst_92 : f32 to vector<4x32xf32>
    %486 = arith.mulf %485, %484 : vector<4x32xf32>
    %cst_93 = arith.constant 1.000000e+00 : f32
    %487 = vector.broadcast %cst_93 : f32 to vector<4x32xf32>
    %488 = arith.addf %487, %486 : vector<4x32xf32>
    %cst_94 = arith.constant 1.000000e+00 : f32
    %489 = vector.broadcast %cst_94 : f32 to vector<4x32xf32>
    %490 = arith.divf %489, %488 : vector<4x32xf32>
    %cst_95 = arith.constant 1.06140542 : f32
    %491 = vector.broadcast %cst_95 : f32 to vector<4x32xf32>
    %492 = arith.mulf %491, %490 : vector<4x32xf32>
    %cst_96 = arith.constant -1.45315206 : f32
    %493 = vector.broadcast %cst_96 : f32 to vector<4x32xf32>
    %494 = arith.addf %492, %493 : vector<4x32xf32>
    %495 = arith.mulf %494, %490 : vector<4x32xf32>
    %cst_97 = arith.constant 1.42141378 : f32
    %496 = vector.broadcast %cst_97 : f32 to vector<4x32xf32>
    %497 = arith.addf %495, %496 : vector<4x32xf32>
    %498 = arith.mulf %497, %490 : vector<4x32xf32>
    %cst_98 = arith.constant -0.284496725 : f32
    %499 = vector.broadcast %cst_98 : f32 to vector<4x32xf32>
    %500 = arith.addf %498, %499 : vector<4x32xf32>
    %501 = arith.mulf %500, %490 : vector<4x32xf32>
    %cst_99 = arith.constant 0.254829586 : f32
    %502 = vector.broadcast %cst_99 : f32 to vector<4x32xf32>
    %503 = arith.addf %501, %502 : vector<4x32xf32>
    %504 = arith.mulf %503, %490 : vector<4x32xf32>
    %cst_100 = arith.constant 0.000000e+00 : f32
    %505 = vector.broadcast %cst_100 : f32 to vector<4x32xf32>
    %506 = arith.subf %505, %484 : vector<4x32xf32>
    %507 = arith.mulf %506, %484 : vector<4x32xf32>
    %508 = math.exp %507 : vector<4x32xf32>
    %509 = arith.mulf %504, %508 : vector<4x32xf32>
    %cst_101 = arith.constant 1.000000e+00 : f32
    %510 = vector.broadcast %cst_101 : f32 to vector<4x32xf32>
    %511 = arith.subf %510, %509 : vector<4x32xf32>
    %512 = arith.mulf %483, %511 : vector<4x32xf32>
    %cst_102 = arith.constant 1.000000e+00 : f32
    %513 = vector.broadcast %cst_102 : f32 to vector<4x32xf32>
    %514 = arith.addf %513, %512 : vector<4x32xf32>
    %515 = arith.mulf %476, %514 : vector<4x32xf32>
    %c0_103 = arith.constant 0 : index
    %c0_104 = arith.constant 0 : index
    %516 = vector.load %arg9[%c0_103, %c0_104] : memref<32x24xf32, #tpu.memory_space<vmem>>, vector<32x24xf32>
    %cst_105 = arith.constant dense<0.000000e+00> : vector<4x24xf32>
    %517 = tpu.matmul %515, %516, %cst_105 {dimension_numbers = #tpu.dot_dimension_numbers<[1], [0], [0], [1], [0, 0, 1, 1], [], []>} : vector<4x32xf32>, vector<32x24xf32>, vector<4x24xf32> -> vector<4x24xf32>
    %c0_106 = arith.constant 0 : index
    %c0_107 = arith.constant 0 : index
    %518 = vector.load %arg10[%c0_106, %c0_107] : memref<1x24xf32, #tpu.memory_space<vmem>>, vector<1x24xf32>
    %519 = vector.broadcast %518 : vector<1x24xf32> to vector<4x24xf32>
    %520 = arith.addf %517, %519 : vector<4x24xf32>
    %c0_108 = arith.constant 0 : index
    %c0_109 = arith.constant 0 : index
    %521 = vector.load %arg12[%c0_108, %c0_109] : memref<4x24xf32, #tpu.memory_space<vmem>>, vector<4x24xf32>
    tpu.vector_store %arg12[%c0_108, %c0_109], %520 {strides = array<i32>} : memref<4x24xf32, #tpu.memory_space<vmem>>, vector<4x24xf32>,
    %c0_110 = arith.constant 0 : index
    %c0_111 = arith.constant 0 : index
    %522 = vector.load %arg11[%c0_110, %c0_111] : memref<4x24xf32, #tpu.memory_space<vmem>>, vector<4x24xf32>
    %523 = arith.subf %520, %522 : vector<4x24xf32>
    %524 = arith.mulf %523, %523 : vector<4x24xf32>
    %525 = vector.shape_cast %524 : vector<4x24xf32> to vector<1x4x24xf32>
    %cst_112 = arith.constant dense<0.000000e+00> : vector<1xf32>
    %526 = vector.multi_reduction <add>, %525, %cst_112 [1, 2] : vector<1x4x24xf32> to vector<1xf32>
    %527 = vector.shape_cast %526 : vector<1xf32> to vector<1x1x1xf32>
    %528 = vector.extract %527[0, 0, 0] : f32 from vector<1x1x1xf32>
    %cst_113 = arith.constant 0.010416667 : f32
    %529 = arith.mulf %528, %cst_113 : f32
    %cst_114 = arith.constant 5.000000e-01 : f32
    %530 = arith.mulf %cst_114, %529 : f32
    %531 = math.tanh %530 : f32
    %cst_115 = arith.constant 5.000000e-01 : f32
    %532 = arith.mulf %cst_115, %531 : f32
    %cst_116 = arith.constant 5.000000e-01 : f32
    %533 = arith.addf %532, %cst_116 : f32
    %534 = vector.broadcast %533 : f32 to vector<1x1xf32>
    %c0_117 = arith.constant 0 : index
    %c0_118 = arith.constant 0 : index
    %535 = vector.load %arg13[%c0_117, %c0_118] : memref<1x1xf32, #tpu.memory_space<vmem>>, vector<1x1xf32>
    tpu.vector_store %arg13[%c0_117, %c0_118], %534 {strides = array<i32>} : memref<1x1xf32, #tpu.memory_space<vmem>>, vector<1x1xf32>,
    return
  }
}

</mosaic_0001>

<bundles_post_ra>
// kernel: tpu_custom_call.1
= control target key start
LH: loop header
LB: loop body
LE: loop exit
PB: predicated region body
PF: predicated region fallthrough
CT: control target
= control target key end

     0   :  { %19 = vsyncpa [#allocation3], 0  ;;  %s2459_s0 = inlined_call_operand.vmem [shape: f32[32,32], index: 0, kind: input, shape index: {}]   ;;  %s2460_s1 = inlined_call_operand.hbm [shape: f32[8,4,32], index: 1, kind: input, shape index: {}]   ;;  %s2461_s2 = inlined_call_operand.hbm [shape: f32[32,128], index: 2, kind: input, shape index: {}]   ;;  %s2462_s3 = inlined_call_operand.hbm [shape: f32[32,128], index: 3, kind: input, shape index: {}]   ;;  %s2463_s4 = inlined_call_operand.vmem [shape: f32[1,128], index: 4, kind: input, shape index: {}]   ;;  %s2464_s5 = inlined_call_operand.hbm [shape: f32[64,128], index: 5, kind: input, shape index: {}]   ;;  %s2465_s6 = inlined_call_operand.vmem [shape: f32[1,128], index: 6, kind: input, shape index: {}]   ;;  %s2466_s7 = inlined_call_operand.hbm [shape: f32[32,32], index: 7, kind: input, shape index: {}]   ;;  %s2467_s8 = inlined_call_operand.vmem [shape: f32[1,32], index: 8, kind: input, shape index: {}]   ;;  %s2468_s9 = inlined_call_operand.vmem [shape: f32[32,24], index: 9, kind: input, shape index: {}]   ;;  %s2469_s10 = inlined_call_operand.vmem [shape: f32[1,24], index: 10, kind: input, shape index: {}]   ;;  %s2470_s11 = inlined_call_operand.vmem [shape: f32[4,24], index: 11, kind: input, shape index: {}]   ;;  %s2471_s12 = inlined_call_operand.hbm [shape: f32[4,24], index: 12, kind: output, shape index: {0}]   ;;  %s2472_s13 = inlined_call_operand.hbm [shape: f32[1,1], index: 13, kind: output, shape index: {1}]  }
   0x1   :  { %20 = vsyncpa [#allocation6], 0 }
   0x2   :  { %21 = vsyncpa [#allocation9], 0 }
   0x3   :  { %22 = vsyncpa [#allocation4], 0  ;;  %s43_s27 = sshll.u32 %s2461_s2, 4  ;;  %s44_s27 = int_to_ptr.hbm [resolvable:$true] %s43_s27 }
   0x4   :  { %23 = vsyncpa [#allocation13], 0  ;;  %s1806_s28 = smov [#allocation5]   ;;  %s71_s15 = sshll.u32 %s2464_s5, 4  ;;  %s72_s15 = int_to_ptr.hbm [resolvable:$true] %s71_s15 }
   0x5   :  { %s45_s29 = sshll.u32 %s1806_s28, 4  ;;  %s1807_s16 = smov 128   ;;  %s46_s29 = int_to_ptr.vmem [resolvable:$true] %s45_s29 }
   0x6   :  { %s1808_s17 = smov 8   ;;  %s1809_s18 = smov [#allocation8]  }
   0x7   :  { %51 = dma.hbm_to_vmem [thread:$0]  %s44_s27, 512, %s46_s29, [#allocation6], %s1807_s16, %s1807_s16, %s1808_s17  }
   0x8   :  { %s73_s19 = sshll.u32 %s1809_s18, 4  ;;  %s30_s21 = sshll.u32 %s2460_s1, 4  ;;  %s74_s19 = int_to_ptr.vmem [resolvable:$true] %s73_s19  ;;  %s31_s21 = int_to_ptr.hbm [resolvable:$true] %s30_s21 }
   0x9   :  { %79 = dma.hbm_to_vmem [thread:$0]  %s72_s15, 1024, %s74_s19, [#allocation9], %s1807_s16, %s1807_s16, %s1808_s17  }
   0xa   :  { %s1810_s5 = smov [#allocation2]   ;;  %s56_s25 = sshll.u32 %s2462_s3, 4  ;;  %s57_s25 = int_to_ptr.hbm [resolvable:$true] %s56_s25 }
   0xb   :  { %s32_s22 = sshll.u32 %s1810_s5, 4  ;;  %s1811_s26 = smov 64   ;;  %s33_s22 = int_to_ptr.vmem [resolvable:$true] %s32_s22 }
   0xc   :  { %s1812_s27 = smov 4   ;;  %s1813_s1 = smov [#allocation7]  }
   0xd   :  { %38 = dma.hbm_to_vmem [thread:$0]  %s31_s21, 512, %s33_s22, [#allocation3], %s1811_s26, %s1811_s26, %s1812_s27  }
   0xe   :  { %s58_s28 = sshll.u32 %s1813_s1, 4  ;;  %s86_s14 = sshll.u32 %s2466_s7, 4  ;;  %s59_s28 = int_to_ptr.vmem [resolvable:$true] %s58_s28  ;;  %s87_s14 = int_to_ptr.hbm [resolvable:$true] %s86_s14 }
   0xf   :  { %64 = dma.hbm_to_vmem [thread:$0]  %s57_s25, 512, %s59_s28, [#allocation6], %s1807_s16, %s1807_s16, %s1808_s17  }
  0x10   :  { %s1814_s15 = smov [#allocation10]  }
  0x11   :  { %s88_s3 = sshll.u32 %s1814_s15, 4  ;;  %s89_s3 = int_to_ptr.vmem [resolvable:$true] %s88_s3 }
  0x12   :  { %94 = dma.hbm_to_vmem [thread:$0]  %s87_s14, 512, %s89_s3, [#allocation9], %s1807_s16, %s1807_s16, %s1808_s17  }
  0x13   :  { %1796 = dma.done.wait [#allocation3], 512  }
  0x14   :  { %1797 = vsyncadd [#allocation3], 4294966784 }
  0x15   :  { %1798 = dma.done.wait [#allocation6], 1024  }
  0x16   :  { %1799 = vsyncadd [#allocation6], 4294966272 }
  0x17   :  { %1800 = dma.done.wait [#allocation9], 1536  }
  0x18   :  { %1801 = vsyncadd [#allocation9], 4294965760  ;;  %v126_v0 = vld [vmem:[#allocation5 + $0x18] sm:$0xff]  ;;  %v125_v1 = vld [vmem:[#allocation5 + $0x10] sm:$0xff]  ;;  %vm156_vm0 = vcmask 261120   ;;  %v1815_v9 = vmov 0.0   ;;  %v198_v15 = vlaneseq }
  0x19   :  { %v1920_v2 = vld [vmem:[#allocation7 + $0x18] sm:$0xff]  ;;  %181 = vmatpush.msra.mxu0 %v126_v0  ;;  %v1923_v3 = vld [vmem:[#allocation7 + $0x10] sm:$0xff]  ;;  %v124_v4 = vld [vmem:[#allocation5 + $0x8] sm:$0xff]  ;;  %s1816_s19 = smov 32   ;;  %vm266_vm4 = vcmask 523264   ;;  %s1817_s21 = smov 96  }
  0x1a   :  { %218 = vmatpush.msra.mxu1 %v1920_v2  ;;  %v1925_v5 = vld [vmem:[#allocation7 + $0x8] sm:$0xff]  ;;  %340 = vmatpush.msra.mxu3 %v1920_v2  ;;  %v123_v6 = vld [vmem:[#allocation5] sm:$0xff]  ;;  %v199_v17 = vand.u32 127, %v198_v15  ;;  %v1965_v30 = vld [vmem:[#allocation8 + $0x38] sm:$0xff]  ;;  %vm1420_vm10 = vcmask 191488   ;;  %s1819_s20 = smov [#allocation11]  }
  0x1b   :  { %182 = vmatpush.msra.mxu0 %v125_v1  ;;  %v1929_v7 = vld [vmem:[#allocation7] sm:$0xff]  ;;  %v1967_v31 = vld [vmem:[#allocation8 + $0x30] sm:$0xff]  ;;  %278 = vmatpush.msra.mxu2 %v1965_v30  ;;  %v1971_v32 = vld [vmem:[#allocation8 + $0x28] sm:$0xff]  ;;  %s1450_s2 = sshll.u32 %s1819_s20, 4  ;;  %s1820_s25 = smov [#allocation12]   ;;  %vm1443_vm11 = vcmask 0   ;;  %s1451_s2 = int_to_ptr.vmem [resolvable:$true] %s1450_s2 }
  0x1c   :  { %219 = vmatpush.msra.mxu1 %v1923_v3  ;;  %341 = vmatpush.msra.mxu3 %v1923_v3  ;;  %v149_v8 = vld [vmem:[%s2459_s0] sm:$0xff]  ;;  %vm200_vm1 = vcmp.ge.s32.totalorder %v199_v17, 64  ;;  %vm201_vm2 = vcmp.lt.s32.totalorder %v199_v17, 96  ;;  %v1981_v34 = vld [vmem:[#allocation8 + $0x18] sm:$0xff]  ;;  %v1986_v35 = vld [vmem:[#allocation8 + $0x10] sm:$0xff]  ;;  %s1461_s27 = sshll.u32 %s1820_s25, 4  ;;  %s1462_s27 = int_to_ptr.vmem [resolvable:$true] %s1461_s27 }
  0x1d   :  { %183 = vmatpush.msra.mxu0 %v124_v4  ;;  %v1947_v10 = vld [vmem:[%s2463_s4] ss:$0 sm:$0xff]  ;;  %vm1953_vm3 = vmand %vm200_vm1, %vm201_vm2  ;;  %279 = vmatpush.msra.mxu2 %v1967_v31  ;;  %v1996_v38 = vld [vmem:[#allocation8 + $0x8] sm:$0xff] }
  0x1e   :  { %220 = vmatpush.msra.mxu1 %v1925_v5  ;;  %342 = vmatpush.msra.mxu3 %v1925_v5  ;;  %v1976_v33 = vld [vmem:[#allocation8 + $0x20] sm:$0xff] }
  0x1f   :  { %184 = vmatpush.msra.mxu0 %v123_v6  ;;  %280 = vmatpush.msra.mxu2 %v1971_v32  ;;  %v1999_v39 = vld [vmem:[#allocation8] sm:$0xff] }
  0x20   :  { %221 = vmatpush.msra.mxu1 %v1929_v7  ;;  %1480 = vmatmul.msk.f32.vlgmr.msra.gmra.mxu0 %vm156_vm0, %v149_v8  ;;  %v2022_v40 = vld [vmem:[#allocation2] sm:$0xf] }
  0x21   :  { %222 = vmatmul.f32.vlgmr.msra.gmra.mxu1 %v1815_v9  ;;  %343 = vmatpush.msra.mxu3 %v1929_v7  ;;  %v2047_v44 = vld [vmem:[%s2465_s6] ss:$0 sm:$0xff] }
  0x22   :  { %416 = vmatpush.msrb.mxu1 %v1965_v30  ;;  %703 = vmatpush.msrb.mxu0 %v1965_v30 }
  0x23   :  { %487 = vmatpush.msrb.mxu3 %v1920_v2  ;;  %281 = vmatpush.msra.mxu2 %v1976_v33 }
  0x24   :  { %417 = vmatpush.msrb.mxu1 %v1967_v31  ;;  %704 = vmatpush.msrb.mxu0 %v1967_v31 }
  0x25   :  { %488 = vmatpush.msrb.mxu3 %v1923_v3  ;;  %282 = vmatpush.msra.mxu2 %v1981_v34 }
  0x26   :  { %418 = vmatpush.msrb.mxu1 %v1971_v32  ;;  %705 = vmatpush.msrb.mxu0 %v1971_v32 }
  0x27   :  { %489 = vmatpush.msrb.mxu3 %v1925_v5  ;;  %283 = vmatpush.msra.mxu2 %v1986_v35 }
  0x28   :  { %419 = vmatpush.msrb.mxu1 %v1976_v33  ;;  %706 = vmatpush.msrb.mxu0 %v1976_v33 }
  0x29   :  { %490 = vmatpush.msrb.mxu3 %v1929_v7  ;;  %284 = vmatpush.msra.mxu2 %v1996_v38 }
  0x2a   :  { %420 = vmatpush.msrb.mxu1 %v1981_v34  ;;  %707 = vmatpush.msrb.mxu0 %v1981_v34 }
  0x2b   :  { %285 = vmatpush.msra.mxu2 %v1999_v39 }
  0x2c   :  { %421 = vmatpush.msrb.mxu1 %v1986_v35  ;;  %708 = vmatpush.msrb.mxu0 %v1986_v35 }
  0x2d   :  { %556 = vmatpush.msrb.mxu2 %v1965_v30 }
  0x2e   :  { %422 = vmatpush.msrb.mxu1 %v1996_v38  ;;  %709 = vmatpush.msrb.mxu0 %v1996_v38 }
  0x2f   :  { %557 = vmatpush.msrb.mxu2 %v1967_v31 }
  0x30   :  { %423 = vmatpush.msrb.mxu1 %v1999_v39  ;;  %710 = vmatpush.msrb.mxu0 %v1999_v39 }
  0x31   :  { %558 = vmatpush.msrb.mxu2 %v1971_v32 }
  0x32   :  { %774 = vmatpush.msra.mxu1 %v1920_v2  ;;  %1061 = vmatpush.msra.mxu0 %v1920_v2 }
  0x33   :  { %559 = vmatpush.msrb.mxu2 %v1976_v33 }
  0x34   :  { %775 = vmatpush.msra.mxu1 %v1923_v3  ;;  %1062 = vmatpush.msra.mxu0 %v1923_v3 }
  0x35   :  { %560 = vmatpush.msrb.mxu2 %v1981_v34 }
  0x36   :  { %776 = vmatpush.msra.mxu1 %v1925_v5  ;;  %1063 = vmatpush.msra.mxu0 %v1925_v5 }
  0x37   :  { %561 = vmatpush.msrb.mxu2 %v1986_v35 }
  0x38   :  { %777 = vmatpush.msra.mxu1 %v1929_v7  ;;  %1064 = vmatpush.msra.mxu0 %v1929_v7 }
  0x39   :  { %562 = vmatpush.msrb.mxu2 %v1996_v38 }
  0x3b   :  { %563 = vmatpush.msrb.mxu2 %v1999_v39 }
  0x9d   :  { %v186_v11 = vpop.f32.mrf.mxu0 }
  0x9e   :  { %v223_v12 = vpop.f32.mrf.mxu1  ;;  %v1950_v13 = vadd.f32 %v1947_v10, %v186_v11 }
  0xa0   :  { %v226_v14 = vadd.f32 %v223_v12, %v1950_v13 }
  0xa2   :  { %v228_v16 = vmul.f32 0.5, %v226_v14 }
  0xa4   :  { %1524 = vtanh.f32 %v228_v16 }
  0xa5   :  { %1526 = vtanh.f32 %v226_v14 }
  0xaa   :  { %v1525_v18 = vpop.eup %1524 }
  0xab   :  { %v230_v19 = vmul.f32 0.5, %v1525_v18  ;;  %v1527_v22 = vpop.eup %1526 }
  0xad   :  { %v231_v21 = vadd.f32 0.5, %v230_v19 }
  0xaf   :  { %v232_v23 = vsel %vm1953_vm3, %v1527_v22, %v231_v21 }
  0xb0   :  { %235 = vrot.lane.b32.xlu0 %v232_v23, %s1811_s26  ;;  %v233_v26 = vmul.f32 0.0, %v232_v23 }
 0x122   :  { %v236_v24 = vpop.permute.xlu0 %235 }
 0x123   :  { %v238_v25 = vmul.f32 %v236_v24, %v232_v23 }
 0x125   :  { %240 = vrot.lane.b32.xlu0 %v238_v25, %s1816_s19 }
 0x197   :  { %v241_v27 = vpop.permute.xlu0 %240 }
 0x198   :  { %v1961_v28 = vadd.f32 %v241_v27, %v233_v26 }
 0x19a   :  { %1528 = vtanh.f32 %v1961_v28 }
 0x1a0   :  { %v1529_v29 = vpop.eup %1528 }
 0x1a1   :  { %246 = vrot.lane.b32.xlu1 %v1529_v29, %s1811_s26  ;;  %v2077_v29 = vld [vmem:[#allocation2 + $0x4] sm:$0xf] }
 0x213   :  { %v247_v36 = vpop.permute.xlu1 %246 }
 0x214   :  { %v249_v37 = vmul.f32 %v247_v36, %v232_v23 }
 0x216   :  { %251 = vrot.lane.b32.xlu1 %v249_v37, %s1816_s19 }
 0x288   :  { %v252_v41 = vpop.permute.xlu1 %251 }
 0x289   :  { %v2025_v42 = vmul.f32 %v252_v41, %v2022_v40 }
 0x28b   :  { %1485 = vmatmul.msk.f32.vlgmr.msra.gmra.mxu3 %vm156_vm0, %v2025_v42  ;;  %v262_v43 = vsel %vm156_vm0, %v2025_v42, 0.0  ;;  %v380_v9 = vrot.slane %v2025_v42, 4 }
 0x28c   :  { %1484 = vmatmul.msk.f32.vlgmr.msra.gmra.mxu2 %vm266_vm4, %v262_v43  ;;  %627 = vmatpush.msra.mxu3 %v1920_v2 }
 0x28d   :  { %990 = vmatpush.msra.mxu2 %v1965_v30 }
 0x28e   :  { %628 = vmatpush.msra.mxu3 %v1923_v3 }
 0x28f   :  { %991 = vmatpush.msra.mxu2 %v1967_v31 }
 0x290   :  { %629 = vmatpush.msra.mxu3 %v1925_v5 }
 0x291   :  { %992 = vmatpush.msra.mxu2 %v1971_v32 }
 0x292   :  { %630 = vmatpush.msra.mxu3 %v1929_v7 }
 0x293   :  { %993 = vmatpush.msra.mxu2 %v1976_v33 }
 0x295   :  { %994 = vmatpush.msra.mxu2 %v1981_v34 }
 0x297   :  { %995 = vmatpush.msra.mxu2 %v1986_v35 }
 0x299   :  { %996 = vmatpush.msra.mxu2 %v1996_v38 }
 0x29b   :  { %997 = vmatpush.msra.mxu2 %v1999_v39 }
 0x30e   :  { %v345_v45 = vpop.f32.mrf.mxu3 }
 0x30f   :  { %v349_v46 = vrot.slane %v345_v45, 4  ;;  %v287_v47 = vpop.f32.mrf.mxu2 }
 0x310   :  { %v288_v48 = vadd.f32 %v2047_v44, %v287_v47 }
 0x311   :  { %v351_v49 = vadd.f32 %v349_v46, %v1950_v13 }
 0x312   :  { %v291_v50 = vmul.f32 0.5, %v288_v48 }
 0x313   :  { %v353_v51 = vmul.f32 0.5, %v351_v49 }
 0x314   :  { %1530 = vtanh.f32 %v291_v50 }
 0x315   :  { %1532 = vtanh.f32 %v353_v51 }
 0x316   :  { %1534 = vtanh.f32 %v288_v48 }
 0x317   :  { %1536 = vtanh.f32 %v351_v49 }
 0x31a   :  { %v1531_v52 = vpop.eup %1530 }
 0x31b   :  { %v1533_v53 = vpop.eup %1532  ;;  %v293_v54 = vmul.f32 0.5, %v1531_v52 }
 0x31c   :  { %v355_v55 = vmul.f32 0.5, %v1533_v53  ;;  %v1535_v57 = vpop.eup %1534 }
 0x31d   :  { %v294_v56 = vadd.f32 0.5, %v293_v54  ;;  %v1537_v59 = vpop.eup %1536 }
 0x31e   :  { %v356_v58 = vadd.f32 0.5, %v355_v55 }
 0x31f   :  { %v295_v60 = vsel %vm1953_vm3, %v1535_v57, %v294_v56 }
 0x320   :  { %298 = vrot.lane.b32.xlu2 %v295_v60, %s1811_s26  ;;  %v357_v61 = vsel %vm1953_vm3, %v1537_v59, %v356_v58  ;;  %v296_v11 = vmul.f32 0.0, %v295_v60 }
 0x321   :  { %365 = vrot.lane.b32.xlu0 %v357_v61, %s1811_s26 }
 0x328   :  { %257 = vrot.lane.b32.xlu2 %v1961_v28, %s1817_s21  ;;  %v150_v28 = vld [vmem:[%s2459_s0 + $0x8] sm:$0xff] }
 0x329   :  { %1481 = vmatmul.msk.f32.gmra.mxu0 %vm156_vm0, %v150_v28 }
 0x37a   :  { %v299_v62 = vpop.permute.xlu2 %298 }
 0x37b   :  { %v301_v63 = vmul.f32 %v299_v62, %v295_v60 }
 0x37d   :  { %303 = vrot.lane.b32.xlu1 %v301_v63, %s1816_s19 }
 0x382   :  { %v258_v0 = vpop.permute.xlu2 %257 }
 0x383   :  { %v2061_v1 = vmul.f32 %v258_v0, %v2022_v40 }
 0x385   :  { %v359_v4 = vrot.slane %v2061_v1, 4 }
 0x387   :  { %360 = vrot.lane.b32.xlu2 %v359_v4, %s1816_s19 }
 0x393   :  { %v366_v6 = vpop.permute.xlu0 %365 }
 0x394   :  { %v368_v8 = vmul.f32 %v366_v6, %v357_v61 }
 0x396   :  { %370 = vrot.lane.b32.xlu0 %v368_v8, %s1816_s19 }
 0x39e   :  { %381 = vrot.lane.b32.xlu0 %v380_v9, %s1817_s21 }
 0x3a6   :  { %v189_v53 = vpop.f32.mrf.mxu0 }
 0x3a7   :  { %v2120_v54 = vadd.f32 %v1947_v10, %v189_v53 }
 0x3e1   :  { %v361_v15 = vpop.permute.xlu2 %360 }
 0x3e2   :  { %v363_v16 = vmul.f32 %v361_v15, %v357_v61 }
 0x3ef   :  { %v304_v12 = vpop.permute.xlu1 %303 }
 0x3f0   :  { %v306_v13 = vadd.f32 %v304_v12, %v296_v11 }
 0x3f2   :  { %1538 = vtanh.f32 %v306_v13 }
 0x3f8   :  { %v1539_v14 = vpop.eup %1538 }
 0x3f9   :  { %309 = vrot.lane.b32.xlu1 %v1539_v14, %s1811_s26 }
 0x408   :  { %v371_v17 = vpop.permute.xlu0 %370 }
 0x409   :  { %v373_v18 = vadd.f32 %v371_v17, %v363_v16 }
 0x40b   :  { %1540 = vtanh.f32 %v373_v18  ;;  %v392_v45 = vsub.f32 %v373_v18, %v361_v15 }
 0x40d   :  { %v394_v47 = vrot.slane %v392_v45, 4 }
 0x410   :  { %v382_v25 = vpop.permute.xlu0 %381 }
 0x411   :  { %v1541_v19 = vpop.eup %1540 }
 0x412   :  { %376 = vrot.lane.b32.xlu2 %v1541_v19, %s1811_s26 }
 0x46b   :  { %v310_v21 = vpop.permute.xlu1 %309 }
 0x46c   :  { %v312_v22 = vmul.f32 %v310_v21, %v295_v60  ;;  %v377_v23 = vpop.permute.xlu2 %376 }
 0x46d   :  { %v379_v24 = vmul.f32 %v377_v23, %v357_v61 }
 0x46e   :  { %314 = vrot.lane.b32.xlu1 %v312_v22, %s1816_s19 }
 0x46f   :  { %v384_v26 = vsub.f32 %v379_v24, %v382_v25 }
 0x471   :  { %v386_v27 = vrot.slane %v384_v26, 4 }
 0x473   :  { %387 = vrot.lane.b32.xlu2 %v386_v27, %s1816_s19 }
 0x476   :  { %320 = vrot.lane.b32.xlu1 %v306_v13, %s1817_s21 }
 0x4cd   :  { %v388_v36 = vpop.permute.xlu2 %387 }
 0x4ce   :  { %v390_v37 = vmul.f32 %v388_v36, %v2077_v29 }
 0x4d0   :  { %v2081_v41 = vadd.f32 %v390_v37, %v2025_v42 }
 0x4d2   :  { %1487 = vmatmul.msk.f32.vlgmr.msrb.gmra.mxu3 %vm156_vm0, %v2081_v41 }
 0x4d3   :  { %843 = vmatpush.msrb.mxu3 %v1965_v30 }
 0x4d5   :  { %844 = vmatpush.msrb.mxu3 %v1967_v31 }
 0x4d7   :  { %845 = vmatpush.msrb.mxu3 %v1971_v32 }
 0x4d9   :  { %846 = vmatpush.msrb.mxu3 %v1976_v33 }
 0x4db   :  { %847 = vmatpush.msrb.mxu3 %v1981_v34 }
 0x4dd   :  { %848 = vmatpush.msrb.mxu3 %v1986_v35 }
 0x4df   :  { %849 = vmatpush.msrb.mxu3 %v1996_v38 }
 0x4e0   :  { %v315_v43 = vpop.permute.xlu1 %314 }
 0x4e1   :  { %v2093_v42 = vmul.f32 %v315_v43, %v2022_v40  ;;  %850 = vmatpush.msrb.mxu3 %v1999_v39 }
 0x4e3   :  { %401 = vrot.lane.b32.xlu0 %v2093_v42, %s1816_s19 }
 0x4e8   :  { %v321_v46 = vpop.permute.xlu1 %320 }
 0x4e9   :  { %v2099_v48 = vmul.f32 %v321_v46, %v2022_v40 }
 0x4eb   :  { %395 = vrot.lane.b32.xlu0 %v394_v47, %s1817_s21  ;;  %435 = vrot.lane.b32.xlu1 %v2099_v48, %s1816_s19 }
 0x555   :  { %v402_v49 = vpop.permute.xlu0 %401  ;;  %v492_v55 = vpop.f32.mrf.mxu3 }
 0x556   :  { %v404_v50 = vsel %vm156_vm0, %v2081_v41, %v402_v49  ;;  %v495_v56 = vadd.f32 %v492_v55, %v2120_v54 }
 0x557   :  { %1486 = vmatmul.msk.f32.vlgmr.msrb.gmra.mxu1 %vm266_vm4, %v404_v50  ;;  %v2139_v50 = vld [vmem:[#allocation2 + $0x8] sm:$0xf] }
 0x558   :  { %914 = vmatpush.msrb.mxu1 %v1920_v2  ;;  %v497_v59 = vmul.f32 0.5, %v495_v56 }
 0x55a   :  { %915 = vmatpush.msrb.mxu1 %v1923_v3 }
 0x55c   :  { %916 = vmatpush.msrb.mxu1 %v1925_v5 }
 0x55d   :  { %v396_v51 = vpop.permute.xlu0 %395  ;;  %v436_v16 = vpop.permute.xlu1 %435 }
 0x55e   :  { %v398_v40 = vmul.f32 %v396_v51, %v2077_v29  ;;  %917 = vmatpush.msrb.mxu1 %v1929_v7 }
 0x560   :  { %v2113_v52 = vadd.f32 %v398_v40, %v2061_v1 }
 0x562   :  { %503 = vrot.lane.b32.xlu1 %v2113_v52, %s1816_s19 }
 0x56a   :  { %455 = vrot.lane.b32.xlu1 %v2093_v42, %s1817_s21 }
 0x5d4   :  { %v425_v57 = vpop.f32.mrf.mxu1  ;;  %v504_v17 = vpop.permute.xlu1 %503 }
 0x5d5   :  { %v426_v58 = vadd.f32 %v2047_v44, %v425_v57 }
 0x5d7   :  { %v429_v60 = vmul.f32 0.5, %v426_v58 }
 0x5d9   :  { %1542 = vtanh.f32 %v429_v60 }
 0x5da   :  { %1544 = vtanh.f32 %v497_v59 }
 0x5db   :  { %1546 = vtanh.f32 %v426_v58 }
 0x5dc   :  { %1548 = vtanh.f32 %v495_v56  ;;  %v456_v36 = vpop.permute.xlu1 %455 }
 0x5df   :  { %v1543_v61 = vpop.eup %1542 }
 0x5e0   :  { %v431_v62 = vmul.f32 0.5, %v1543_v61  ;;  %v1545_v63 = vpop.eup %1544 }
 0x5e1   :  { %v1547_v1 = vpop.eup %1546  ;;  %v499_v4 = vmul.f32 0.5, %v1545_v63 }
 0x5e2   :  { %v432_v0 = vadd.f32 0.5, %v431_v62  ;;  %v1549_v9 = vpop.eup %1548 }
 0x5e3   :  { %v500_v8 = vadd.f32 0.5, %v499_v4 }
 0x5e4   :  { %v433_v6 = vsel %vm1953_vm3, %v1547_v1, %v432_v0 }
 0x5e5   :  { %440 = vrot.lane.b32.xlu2 %v433_v6, %s1811_s26  ;;  %v501_v11 = vsel %vm1953_vm3, %v1549_v9, %v500_v8  ;;  %v438_v23 = vmul.f32 %v436_v16, %v433_v6 }
 0x5e6   :  { %v506_v18 = vmul.f32 %v504_v17, %v501_v11 }
 0x5ed   :  { %508 = vrot.lane.b32.xlu2 %v501_v11, %s1811_s26 }
 0x63f   :  { %v441_v12 = vpop.permute.xlu2 %440 }
 0x640   :  { %v443_v13 = vmul.f32 %v441_v12, %v433_v6 }
 0x642   :  { %445 = vrot.lane.b32.xlu0 %v443_v13, %s1816_s19 }
 0x647   :  { %v509_v14 = vpop.permute.xlu2 %508 }
 0x648   :  { %v511_v15 = vmul.f32 %v509_v14, %v501_v11 }
 0x64a   :  { %513 = vrot.lane.b32.xlu2 %v511_v15, %s1816_s19 }
 0x6a4   :  { %v514_v19 = vpop.permute.xlu2 %513 }
 0x6a5   :  { %v516_v21 = vadd.f32 %v514_v19, %v506_v18 }
 0x6a7   :  { %1550 = vtanh.f32 %v516_v21 }
 0x6ad   :  { %v1551_v22 = vpop.eup %1550 }
 0x6ae   :  { %519 = vrot.lane.b32.xlu2 %v1551_v22, %s1811_s26 }
 0x6b4   :  { %v446_v24 = vpop.permute.xlu0 %445 }
 0x6b5   :  { %v448_v25 = vadd.f32 %v446_v24, %v438_v23 }
 0x6b7   :  { %1552 = vtanh.f32 %v448_v25  ;;  %v465_v49 = vsub.f32 %v448_v25, %v436_v16 }
 0x6bd   :  { %v1553_v26 = vpop.eup %1552 }
 0x6be   :  { %451 = vrot.lane.b32.xlu0 %v1553_v26, %s1811_s26 }
 0x6c6   :  { %523 = vrot.lane.b32.xlu0 %v2081_v41, %s1817_s21 }
 0x708   :  { %v520_v43 = vpop.permute.xlu2 %519 }
 0x709   :  { %v522_v45 = vmul.f32 %v520_v43, %v501_v11 }
 0x730   :  { %v452_v27 = vpop.permute.xlu0 %451 }
 0x731   :  { %v454_v28 = vmul.f32 %v452_v27, %v433_v6 }
 0x733   :  { %v458_v37 = vsub.f32 %v454_v28, %v456_v36 }
 0x735   :  { %460 = vrot.lane.b32.xlu1 %v458_v37, %s1816_s19 }
 0x738   :  { %v524_v46 = vpop.permute.xlu0 %523 }
 0x739   :  { %v526_v47 = vsub.f32 %v522_v45, %v524_v46 }
 0x73b   :  { %528 = vrot.lane.b32.xlu2 %v526_v47, %s1816_s19 }
 0x73d   :  { %467 = vrot.lane.b32.xlu1 %v465_v49, %s1817_s21 }
 0x795   :  { %v529_v51 = vpop.permute.xlu2 %528 }
 0x796   :  { %v531_v40 = vmul.f32 %v529_v51, %v2139_v50 }
 0x798   :  { %v2143_v53 = vadd.f32 %v531_v40, %v2081_v41  ;;  %v533_v41 = vsub.f32 %v516_v21, %v504_v17 }
 0x79a   :  { %1489 = vmatmul.msk.f32.vlgmr.msra.gmra.mxu3 %vm156_vm0, %v2143_v53  ;;  %v667_v43 = vrot.slane %v2143_v53, 4 }
 0x79b   :  { %1201 = vmatpush.msra.mxu3 %v1920_v2 }
 0x79d   :  { %1202 = vmatpush.msra.mxu3 %v1923_v3 }
 0x79f   :  { %1203 = vmatpush.msra.mxu3 %v1925_v5 }
 0x7a1   :  { %1204 = vmatpush.msra.mxu3 %v1929_v7 }
 0x7a7   :  { %v461_v55 = vpop.permute.xlu1 %460 }
 0x7a8   :  { %v463_v56 = vmul.f32 %v461_v55, %v2077_v29 }
 0x7aa   :  { %v2153_v57 = vadd.f32 %v463_v56, %v2093_v42 }
 0x7ac   :  { %541 = vrot.lane.b32.xlu0 %v2153_v57, %s1816_s19 }
 0x7af   :  { %v468_v15 = vpop.permute.xlu1 %467 }
 0x7b0   :  { %v470_v16 = vmul.f32 %v468_v15, %v2077_v29 }
 0x7b2   :  { %v471_v17 = vadd.f32 %v470_v16, %v2099_v48 }
 0x7b4   :  { %535 = vrot.lane.b32.xlu0 %v533_v41, %s1817_s21 }
 0x81d   :  { %v632_v58 = vpop.f32.mrf.mxu3 }
 0x81e   :  { %v636_v2 = vrot.slane %v632_v58, 4  ;;  %v542_v59 = vpop.permute.xlu0 %541 }
 0x81f   :  { %v544_v3 = vsel %vm156_vm0, %v2143_v53, %v542_v59  ;;  %v2193_v59 = vld [vmem:[#allocation2 + $0xc] sm:$0xf] }
 0x820   :  { %v638_v5 = vadd.f32 %v636_v2, %v2120_v54  ;;  %1488 = vmatmul.msk.f32.vlgmr.msrb.gmra.mxu2 %vm266_vm4, %v544_v3  ;;  %v151_v2 = vld [vmem:[%s2459_s0 + $0x10] sm:$0xff] }
 0x821   :  { %1482 = vmatmul.msk.f32.gmra.mxu0 %vm156_vm0, %v151_v2 }
 0x822   :  { %v640_v7 = vmul.f32 0.5, %v638_v5 }
 0x824   :  { %1554 = vtanh.f32 %v640_v7 }
 0x825   :  { %1556 = vtanh.f32 %v638_v5 }
 0x826   :  { %v536_v61 = vpop.permute.xlu0 %535 }
 0x827   :  { %v538_v0 = vmul.f32 %v536_v61, %v2139_v50 }
 0x829   :  { %v2167_v4 = vadd.f32 %v538_v0, %v2113_v52 }
 0x82a   :  { %v1555_v42 = vpop.eup %1554 }
 0x82b   :  { %v642_v60 = vmul.f32 0.5, %v1555_v42  ;;  %v1557_v63 = vpop.eup %1556  ;;  %v646_v54 = vrot.slane %v2167_v4, 4 }
 0x82d   :  { %v643_v62 = vadd.f32 0.5, %v642_v60 }
 0x82f   :  { %v644_v1 = vsel %vm1953_vm3, %v1557_v63, %v643_v62 }
 0x830   :  { %652 = vrot.lane.b32.xlu1 %v644_v1, %s1811_s26 }
 0x838   :  { %647 = vrot.lane.b32.xlu1 %v646_v54, %s1816_s19 }
 0x840   :  { %595 = vrot.lane.b32.xlu1 %v2153_v57, %s1817_s21 }
 0x8a2   :  { %v653_v18 = vpop.permute.xlu1 %652 }
 0x8a3   :  { %v565_v6 = vpop.f32.mrf.mxu2  ;;  %v655_v19 = vmul.f32 %v653_v18, %v644_v1 }
 0x8a4   :  { %v566_v8 = vadd.f32 %v2047_v44, %v565_v6 }
 0x8a6   :  { %v569_v9 = vmul.f32 0.5, %v566_v8 }
 0x8a8   :  { %1558 = vtanh.f32 %v569_v9 }
 0x8a9   :  { %1560 = vtanh.f32 %v566_v8 }
 0x8aa   :  { %v648_v24 = vpop.permute.xlu1 %647 }
 0x8ab   :  { %v650_v25 = vmul.f32 %v648_v24, %v644_v1 }
 0x8ae   :  { %v1559_v11 = vpop.eup %1558 }
 0x8af   :  { %v571_v12 = vmul.f32 0.5, %v1559_v11  ;;  %v1561_v14 = vpop.eup %1560 }
 0x8b1   :  { %v572_v13 = vadd.f32 0.5, %v571_v12 }
 0x8b2   :  { %v596_v47 = vpop.permute.xlu1 %595 }
 0x8b3   :  { %v573_v52 = vsel %vm1953_vm3, %v1561_v14, %v572_v13 }
 0x8b4   :  { %580 = vrot.lane.b32.xlu2 %v573_v52, %s1811_s26 }
 0x8bc   :  { %575 = vrot.lane.b32.xlu2 %v471_v17, %s1816_s19 }
 0x8c4   :  { %657 = vrot.lane.b32.xlu2 %v655_v19, %s1816_s19 }
 0x90e   :  { %v581_v21 = vpop.permute.xlu2 %580 }
 0x90f   :  { %v583_v22 = vmul.f32 %v581_v21, %v573_v52 }
 0x911   :  { %585 = vrot.lane.b32.xlu0 %v583_v22, %s1816_s19 }
 0x916   :  { %v576_v23 = vpop.permute.xlu2 %575 }
 0x917   :  { %v578_v29 = vmul.f32 %v576_v23, %v573_v52 }
 0x91e   :  { %v658_v26 = vpop.permute.xlu2 %657 }
 0x91f   :  { %v660_v27 = vadd.f32 %v658_v26, %v650_v25 }
 0x921   :  { %1562 = vtanh.f32 %v660_v27  ;;  %v679_v61 = vsub.f32 %v660_v27, %v648_v24 }
 0x923   :  { %v681_v0 = vrot.slane %v679_v61, 4 }
 0x927   :  { %v1563_v28 = vpop.eup %1562 }
 0x928   :  { %663 = vrot.lane.b32.xlu2 %v1563_v28, %s1811_s26 }
 0x982   :  { %v664_v51 = vpop.permute.xlu2 %663 }
 0x983   :  { %v586_v48 = vpop.permute.xlu0 %585  ;;  %v666_v40 = vmul.f32 %v664_v51, %v644_v1 }
 0x984   :  { %v588_v36 = vadd.f32 %v586_v48, %v578_v29 }
 0x986   :  { %1564 = vtanh.f32 %v588_v36  ;;  %v605_v41 = vsub.f32 %v588_v36, %v576_v23 }
 0x98c   :  { %v1565_v37 = vpop.eup %1564 }
 0x98d   :  { %591 = vrot.lane.b32.xlu0 %v1565_v37, %s1811_s26 }
 0x995   :  { %668 = vrot.lane.b32.xlu0 %v667_v43, %s1817_s21 }
 0x9ff   :  { %v592_v45 = vpop.permute.xlu0 %591 }
 0xa00   :  { %v594_v46 = vmul.f32 %v592_v45, %v573_v52 }
 0xa02   :  { %v598_v49 = vsub.f32 %v594_v46, %v596_v47 }
 0xa04   :  { %600 = vrot.lane.b32.xlu1 %v598_v49, %s1816_s19 }
 0xa07   :  { %v669_v55 = vpop.permute.xlu0 %668 }
 0xa08   :  { %v671_v56 = vsub.f32 %v666_v40, %v669_v55 }
 0xa0a   :  { %v673_v58 = vrot.slane %v671_v56, 4 }
 0xa0c   :  { %674 = vrot.lane.b32.xlu2 %v673_v58, %s1816_s19  ;;  %607 = vrot.lane.b32.xlu1 %v605_v41, %s1817_s21  ;;  %v2266_v58 = vld [vmem:[#allocation2 + $0x10] sm:$0xf] }
 0xa66   :  { %v675_v3 = vpop.permute.xlu2 %674 }
 0xa67   :  { %v677_v5 = vmul.f32 %v675_v3, %v2193_v59 }
 0xa69   :  { %v2197_v7 = vadd.f32 %v677_v5, %v2143_v53 }
 0xa6b   :  { %1491 = vmatmul.msk.f32.vlgmr.msra.gmra.mxu1 %vm156_vm0, %v2197_v7 }
 0xa6c   :  { %1130 = vmatpush.msra.mxu1 %v1965_v30 }
 0xa6e   :  { %1131 = vmatpush.msra.mxu1 %v1967_v31 }
 0xa70   :  { %1132 = vmatpush.msra.mxu1 %v1971_v32 }
 0xa72   :  { %1133 = vmatpush.msra.mxu1 %v1976_v33 }
 0xa74   :  { %1134 = vmatpush.msra.mxu1 %v1981_v34 }
 0xa76   :  { %v601_v42 = vpop.permute.xlu1 %600  ;;  %1135 = vmatpush.msra.mxu1 %v1986_v35 }
 0xa77   :  { %v603_v60 = vmul.f32 %v601_v42, %v2139_v50 }
 0xa78   :  { %1136 = vmatpush.msra.mxu1 %v1996_v38 }
 0xa79   :  { %v2210_v53 = vadd.f32 %v603_v60, %v2153_v57  ;;  %v152_v57 = vld [vmem:[%s2459_s0 + $0x18] sm:$0xff] }
 0xa7a   :  { %1137 = vmatpush.msra.mxu1 %v1999_v39  ;;  %1483 = vmatmul.msk.f32.gmra.mxu0 %vm156_vm0, %v152_v57 }
 0xa7b   :  { %688 = vrot.lane.b32.xlu0 %v2210_v53, %s1816_s19 }
 0xa7e   :  { %v608_v62 = vpop.permute.xlu1 %607 }
 0xa7f   :  { %v610_v63 = vmul.f32 %v608_v62, %v2139_v50 }
 0xa81   :  { %v2216_v1 = vadd.f32 %v610_v63, %v471_v17 }
 0xa83   :  { %682 = vrot.lane.b32.xlu0 %v681_v0, %s1817_s21  ;;  %722 = vrot.lane.b32.xlu1 %v2216_v1, %s1816_s19 }
 0xaed   :  { %v689_v54 = vpop.permute.xlu0 %688 }
 0xaee   :  { %v691_v6 = vsel %vm156_vm0, %v2197_v7, %v689_v54 }
 0xaef   :  { %1490 = vmatmul.msk.f32.vlgmr.msrb.gmra.mxu0 %vm266_vm4, %v691_v6 }
 0xaf0   :  { %1269 = vmatpush.msrb.mxu0 %v1965_v30  ;;  %v192_v30 = vpop.f32.mrf.mxu0 }
 0xaf2   :  { %1270 = vmatpush.msrb.mxu0 %v1967_v31 }
 0xaf4   :  { %1271 = vmatpush.msrb.mxu0 %v1971_v32  ;;  %v2247_v32 = vadd.f32 %v1947_v10, %v192_v30 }
 0xaf5   :  { %v683_v50 = vpop.permute.xlu0 %682  ;;  %v723_v24 = vpop.permute.xlu1 %722 }
 0xaf6   :  { %v685_v8 = vmul.f32 %v683_v50, %v2193_v59  ;;  %1272 = vmatpush.msrb.mxu0 %v1976_v33  ;;  %v779_v33 = vpop.f32.mrf.mxu1 }
 0xaf8   :  { %v2234_v9 = vadd.f32 %v685_v8, %v2167_v4  ;;  %1273 = vmatpush.msrb.mxu0 %v1981_v34  ;;  %v2244_v31 = vpop.f32.mrf.mxu0  ;;  %v782_v34 = vadd.f32 %v779_v33, %v2247_v32 }
 0xafa   :  { %790 = vrot.lane.b32.xlu1 %v2234_v9, %s1816_s19  ;;  %1274 = vmatpush.msrb.mxu0 %v1986_v35  ;;  %v784_v35 = vmul.f32 0.5, %v782_v34 }
 0xafc   :  { %1275 = vmatpush.msrb.mxu0 %v1996_v38 }
 0xafe   :  { %1276 = vmatpush.msrb.mxu0 %v1999_v39 }
 0xb02   :  { %742 = vrot.lane.b32.xlu1 %v2210_v53, %s1817_s21 }
 0xb6c   :  { %v712_v4 = vpop.f32.mrf.mxu0  ;;  %v791_v25 = vpop.permute.xlu1 %790 }
 0xb6d   :  { %v713_v11 = vadd.f32 %v2047_v44, %v712_v4 }
 0xb6f   :  { %v716_v12 = vmul.f32 0.5, %v713_v11 }
 0xb71   :  { %1566 = vtanh.f32 %v716_v12 }
 0xb72   :  { %1568 = vtanh.f32 %v784_v35 }
 0xb73   :  { %1570 = vtanh.f32 %v713_v11 }
 0xb74   :  { %1572 = vtanh.f32 %v782_v34  ;;  %v743_v47 = vpop.permute.xlu1 %742 }
 0xb77   :  { %v1567_v38 = vpop.eup %1566 }
 0xb78   :  { %v718_v39 = vmul.f32 0.5, %v1567_v38  ;;  %v1569_v13 = vpop.eup %1568 }
 0xb79   :  { %v1571_v15 = vpop.eup %1570  ;;  %v786_v52 = vmul.f32 0.5, %v1569_v13 }
 0xb7a   :  { %v719_v14 = vadd.f32 0.5, %v718_v39  ;;  %v1573_v17 = vpop.eup %1572 }
 0xb7b   :  { %v787_v16 = vadd.f32 0.5, %v786_v52 }
 0xb7c   :  { %v720_v10 = vsel %vm1953_vm3, %v1571_v15, %v719_v14 }
 0xb7d   :  { %727 = vrot.lane.b32.xlu2 %v720_v10, %s1811_s26  ;;  %v788_v18 = vsel %vm1953_vm3, %v1573_v17, %v787_v16  ;;  %v725_v48 = vmul.f32 %v723_v24, %v720_v10 }
 0xb7e   :  { %v793_v26 = vmul.f32 %v791_v25, %v788_v18 }
 0xb85   :  { %795 = vrot.lane.b32.xlu2 %v788_v18, %s1811_s26 }
 0xbd7   :  { %v728_v19 = vpop.permute.xlu2 %727 }
 0xbd8   :  { %v730_v21 = vmul.f32 %v728_v19, %v720_v10 }
 0xbda   :  { %732 = vrot.lane.b32.xlu0 %v730_v21, %s1816_s19 }
 0xbdf   :  { %v796_v22 = vpop.permute.xlu2 %795 }
 0xbe0   :  { %v798_v23 = vmul.f32 %v796_v22, %v788_v18 }
 0xbe2   :  { %800 = vrot.lane.b32.xlu2 %v798_v23, %s1816_s19 }
 0xc3c   :  { %v801_v27 = vpop.permute.xlu2 %800 }
 0xc3d   :  { %v803_v28 = vadd.f32 %v801_v27, %v793_v26 }
 0xc3f   :  { %1574 = vtanh.f32 %v803_v28  ;;  %v820_v62 = vsub.f32 %v803_v28, %v791_v25 }
 0xc45   :  { %v1575_v29 = vpop.eup %1574 }
 0xc46   :  { %806 = vrot.lane.b32.xlu2 %v1575_v29, %s1811_s26 }
 0xc4c   :  { %v733_v36 = vpop.permute.xlu0 %732 }
 0xc4d   :  { %v735_v37 = vadd.f32 %v733_v36, %v725_v48 }
 0xc4f   :  { %1576 = vtanh.f32 %v735_v37  ;;  %v752_v41 = vsub.f32 %v735_v37, %v723_v24 }
 0xc55   :  { %v1577_v43 = vpop.eup %1576 }
 0xc56   :  { %738 = vrot.lane.b32.xlu0 %v1577_v43, %s1811_s26 }
 0xc5e   :  { %810 = vrot.lane.b32.xlu0 %v2197_v7, %s1817_s21 }
 0xca0   :  { %v807_v51 = vpop.permute.xlu2 %806 }
 0xca1   :  { %v809_v40 = vmul.f32 %v807_v51, %v788_v18 }
 0xcc8   :  { %v739_v45 = vpop.permute.xlu0 %738 }
 0xcc9   :  { %v741_v46 = vmul.f32 %v739_v45, %v720_v10 }
 0xccb   :  { %v745_v49 = vsub.f32 %v741_v46, %v743_v47 }
 0xccd   :  { %747 = vrot.lane.b32.xlu1 %v745_v49, %s1816_s19 }
 0xcd0   :  { %v811_v55 = vpop.permute.xlu0 %810 }
 0xcd1   :  { %v813_v56 = vsub.f32 %v809_v40, %v811_v55 }
 0xcd3   :  { %815 = vrot.lane.b32.xlu2 %v813_v56, %s1816_s19  ;;  %v2312_v56 = vld [vmem:[#allocation2 + $0x14] sm:$0xf] }
 0xcd5   :  { %754 = vrot.lane.b32.xlu1 %v752_v41, %s1817_s21 }
 0xd2d   :  { %v816_v2 = vpop.permute.xlu2 %815 }
 0xd2e   :  { %v818_v3 = vmul.f32 %v816_v2, %v2266_v58 }
 0xd30   :  { %v2270_v5 = vadd.f32 %v818_v3, %v2197_v7 }
 0xd32   :  { %1493 = vmatmul.msk.f32.vlgmr.msrb.gmra.mxu1 %vm156_vm0, %v2270_v5  ;;  %v954_v48 = vrot.slane %v2270_v5, 4 }
 0xd3f   :  { %v748_v42 = vpop.permute.xlu1 %747 }
 0xd40   :  { %v750_v60 = vmul.f32 %v748_v42, %v2193_v59 }
 0xd42   :  { %v2276_v61 = vadd.f32 %v750_v60, %v2210_v53 }
 0xd44   :  { %828 = vrot.lane.b32.xlu0 %v2276_v61, %s1816_s19 }
 0xd47   :  { %v755_v52 = vpop.permute.xlu1 %754 }
 0xd48   :  { %v757_v10 = vmul.f32 %v755_v52, %v2193_v59 }
 0xd4a   :  { %v758_v16 = vadd.f32 %v757_v10, %v2216_v1 }
 0xd4c   :  { %822 = vrot.lane.b32.xlu0 %v820_v62, %s1817_s21 }
 0xdaf   :  { %v919_v63 = vpop.f32.mrf.mxu1 }
 0xdb0   :  { %v923_v0 = vrot.slane %v919_v63, 4 }
 0xdb2   :  { %v925_v7 = vadd.f32 %v923_v0, %v2247_v32 }
 0xdb4   :  { %v927_v57 = vmul.f32 0.5, %v925_v7 }
 0xdb6   :  { %1578 = vtanh.f32 %v927_v57  ;;  %v829_v54 = vpop.permute.xlu0 %828 }
 0xdb7   :  { %v831_v6 = vsel %vm156_vm0, %v2270_v5, %v829_v54  ;;  %1580 = vtanh.f32 %v925_v7 }
 0xdb8   :  { %1492 = vmatmul.msk.f32.vlgmr.msrb.gmra.mxu3 %vm266_vm4, %v831_v6 }
 0xdbc   :  { %v1579_v53 = vpop.eup %1578 }
 0xdbd   :  { %v929_v50 = vmul.f32 0.5, %v1579_v53  ;;  %v1581_v33 = vpop.eup %1580 }
 0xdbe   :  { %v823_v8 = vpop.permute.xlu0 %822 }
 0xdbf   :  { %v930_v30 = vadd.f32 0.5, %v929_v50  ;;  %v825_v34 = vmul.f32 %v823_v8, %v2266_v58  ;;  %v1626_v8 = vld [vmem:[%s2463_s4] ss:$0 sm:$0xff]  ;;  %s1463_s4 = sshll.u32 %s2472_s13, 4  ;;  %s1464_s4 = int_to_ptr.hbm [resolvable:$true] %s1463_s4 }
 0xdc1   :  { %v931_v4 = vsel %vm1953_vm3, %v1581_v33, %v930_v30  ;;  %v2290_v32 = vadd.f32 %v825_v34, %v2234_v9  ;;  %v2347_v30 = vadd.f32 %v1626_v8, %v2244_v31 }
 0xdc2   :  { %939 = vrot.lane.b32.xlu1 %v931_v4, %s1811_s26 }
 0xdc3   :  { %v933_v11 = vrot.slane %v2290_v32, 4 }
 0xdca   :  { %934 = vrot.lane.b32.xlu1 %v933_v11, %s1816_s19 }
 0xdd2   :  { %882 = vrot.lane.b32.xlu1 %v2276_v61, %s1817_s21 }
 0xe34   :  { %v940_v17 = vpop.permute.xlu1 %939 }
 0xe35   :  { %v942_v18 = vmul.f32 %v940_v17, %v931_v4 }
 0xe3b   :  { %v852_v35 = vpop.f32.mrf.mxu3 }
 0xe3c   :  { %v853_v12 = vadd.f32 %v2047_v44, %v852_v35  ;;  %v935_v23 = vpop.permute.xlu1 %934 }
 0xe3d   :  { %v937_v24 = vmul.f32 %v935_v23, %v931_v4 }
 0xe3e   :  { %v856_v38 = vmul.f32 0.5, %v853_v12 }
 0xe40   :  { %1582 = vtanh.f32 %v856_v38 }
 0xe41   :  { %1584 = vtanh.f32 %v853_v12 }
 0xe44   :  { %v883_v43 = vpop.permute.xlu1 %882 }
 0xe46   :  { %v1583_v39 = vpop.eup %1582 }
 0xe47   :  { %v858_v13 = vmul.f32 0.5, %v1583_v39  ;;  %v1585_v15 = vpop.eup %1584 }
 0xe49   :  { %v859_v14 = vadd.f32 0.5, %v858_v13 }
 0xe4b   :  { %v860_v9 = vsel %vm1953_vm3, %v1585_v15, %v859_v14 }
 0xe4c   :  { %867 = vrot.lane.b32.xlu2 %v860_v9, %s1811_s26 }
 0xe54   :  { %862 = vrot.lane.b32.xlu2 %v758_v16, %s1816_s19 }
 0xe5c   :  { %944 = vrot.lane.b32.xlu2 %v942_v18, %s1816_s19 }
 0xea6   :  { %v868_v19 = vpop.permute.xlu2 %867 }
 0xea7   :  { %v870_v21 = vmul.f32 %v868_v19, %v860_v9 }
 0xea9   :  { %872 = vrot.lane.b32.xlu0 %v870_v21, %s1816_s19 }
 0xeae   :  { %v863_v22 = vpop.permute.xlu2 %862 }
 0xeaf   :  { %v865_v59 = vmul.f32 %v863_v22, %v860_v9 }
 0xeb6   :  { %v945_v25 = vpop.permute.xlu2 %944 }
 0xeb7   :  { %v947_v26 = vadd.f32 %v945_v25, %v937_v24 }
 0xeb9   :  { %1586 = vtanh.f32 %v947_v26  ;;  %v966_v63 = vsub.f32 %v947_v26, %v935_v23 }
 0xebb   :  { %v968_v57 = vrot.slane %v966_v63, 4 }
 0xebf   :  { %v1587_v27 = vpop.eup %1586 }
 0xec0   :  { %950 = vrot.lane.b32.xlu2 %v1587_v27, %s1811_s26 }
 0xf1a   :  { %v951_v46 = vpop.permute.xlu2 %950 }
 0xf1b   :  { %v873_v1 = vpop.permute.xlu0 %872  ;;  %v953_v47 = vmul.f32 %v951_v46, %v931_v4 }
 0xf1c   :  { %v875_v28 = vadd.f32 %v873_v1, %v865_v59 }
 0xf1e   :  { %1588 = vtanh.f32 %v875_v28  ;;  %v892_v40 = vsub.f32 %v875_v28, %v863_v22 }
 0xf24   :  { %v1589_v29 = vpop.eup %1588 }
 0xf25   :  { %878 = vrot.lane.b32.xlu0 %v1589_v29, %s1811_s26 }
 0xf2d   :  { %955 = vrot.lane.b32.xlu0 %v954_v48, %s1817_s21 }
 0xf97   :  { %v879_v36 = vpop.permute.xlu0 %878 }
 0xf98   :  { %v881_v37 = vmul.f32 %v879_v36, %v860_v9 }
 0xf9a   :  { %v885_v45 = vsub.f32 %v881_v37, %v883_v43 }
 0xf9c   :  { %887 = vrot.lane.b32.xlu1 %v885_v45, %s1816_s19 }
 0xf9f   :  { %v956_v49 = vpop.permute.xlu0 %955 }
 0xfa0   :  { %v958_v51 = vsub.f32 %v953_v47, %v956_v49  ;;  %v2366_v47 = vld [vmem:[#allocation2 + $0x18] sm:$0xf] }
 0xfa2   :  { %v960_v55 = vrot.slane %v958_v51, 4 }
 0xfa4   :  { %961 = vrot.lane.b32.xlu2 %v960_v55, %s1816_s19  ;;  %894 = vrot.lane.b32.xlu1 %v892_v40, %s1817_s21 }
 0xffe   :  { %v962_v41 = vpop.permute.xlu2 %961 }
 0xfff   :  { %v964_v2 = vmul.f32 %v962_v41, %v2312_v56 }
0x1001   :  { %v2316_v3 = vadd.f32 %v964_v2, %v2270_v5 }
0x1003   :  { %1495 = vmatmul.msk.f32.vlgmr.msra.gmra.mxu0 %vm156_vm0, %v2316_v3 }
0x100e   :  { %v888_v42 = vpop.permute.xlu1 %887 }
0x100f   :  { %v890_v60 = vmul.f32 %v888_v42, %v2266_v58 }
0x1011   :  { %v2322_v62 = vadd.f32 %v890_v60, %v2276_v61 }
0x1013   :  { %975 = vrot.lane.b32.xlu0 %v2322_v62, %s1816_s19 }
0x1016   :  { %v895_v0 = vpop.permute.xlu1 %894 }
0x1017   :  { %v897_v7 = vmul.f32 %v895_v0, %v2266_v58 }
0x1019   :  { %v2327_v54 = vadd.f32 %v897_v7, %v758_v16 }
0x101b   :  { %969 = vrot.lane.b32.xlu0 %v968_v57, %s1817_s21  ;;  %1009 = vrot.lane.b32.xlu1 %v2327_v54, %s1816_s19 }
0x1080   :  { %v1066_v58 = vpop.f32.mrf.mxu0 }
0x1081   :  { %v1069_v33 = vadd.f32 %v1066_v58, %v2347_v30 }
0x1085   :  { %v976_v5 = vpop.permute.xlu0 %975 }
0x1086   :  { %v978_v61 = vsel %vm156_vm0, %v2316_v3, %v976_v5 }
0x1087   :  { %1494 = vmatmul.msk.f32.vlgmr.msra.gmra.mxu2 %vm266_vm4, %v978_v61 }
0x108d   :  { %v970_v6 = vpop.permute.xlu0 %969  ;;  %v1010_v18 = vpop.permute.xlu1 %1009 }
0x108e   :  { %v972_v53 = vmul.f32 %v970_v6, %v2312_v56 }
0x1090   :  { %v2337_v50 = vadd.f32 %v972_v53, %v2290_v32  ;;  %v1071_v32 = vmul.f32 0.5, %v1069_v33 }
0x1092   :  { %1077 = vrot.lane.b32.xlu1 %v2337_v50, %s1816_s19 }
0x109a   :  { %1029 = vrot.lane.b32.xlu1 %v2322_v62, %s1817_s21 }
0x1104   :  { %v1078_v19 = vpop.permute.xlu1 %1077 }
0x110a   :  { %v999_v34 = vpop.f32.mrf.mxu2 }
0x110b   :  { %v1000_v4 = vadd.f32 %v2047_v44, %v999_v34 }
0x110c   :  { %v1030_v29 = vpop.permute.xlu1 %1029 }
0x110d   :  { %v1003_v11 = vmul.f32 0.5, %v1000_v4 }
0x110f   :  { %1590 = vtanh.f32 %v1003_v11 }
0x1110   :  { %1592 = vtanh.f32 %v1071_v32 }
0x1111   :  { %1594 = vtanh.f32 %v1000_v4  ;;  %v2396_v4 = vld [vmem:[%s2465_s6] ss:$0 sm:$0xff] }
0x1112   :  { %1596 = vtanh.f32 %v1069_v33 }
0x1115   :  { %v1591_v35 = vpop.eup %1590 }
0x1116   :  { %v1005_v12 = vmul.f32 0.5, %v1591_v35  ;;  %v1593_v38 = vpop.eup %1592 }
0x1117   :  { %v1595_v13 = vpop.eup %1594  ;;  %v1073_v14 = vmul.f32 0.5, %v1593_v38 }
0x1118   :  { %v1006_v39 = vadd.f32 0.5, %v1005_v12  ;;  %v1597_v52 = vpop.eup %1596 }
0x1119   :  { %v1074_v15 = vadd.f32 0.5, %v1073_v14 }
0x111a   :  { %v1007_v31 = vsel %vm1953_vm3, %v1595_v13, %v1006_v39 }
0x111b   :  { %1014 = vrot.lane.b32.xlu2 %v1007_v31, %s1811_s26  ;;  %v1075_v44 = vsel %vm1953_vm3, %v1597_v52, %v1074_v15  ;;  %v1012_v25 = vmul.f32 %v1010_v18, %v1007_v31 }
0x111c   :  { %v1080_v21 = vmul.f32 %v1078_v19, %v1075_v44 }
0x1123   :  { %1082 = vrot.lane.b32.xlu2 %v1075_v44, %s1811_s26 }
0x1175   :  { %v1015_v9 = vpop.permute.xlu2 %1014 }
0x1176   :  { %v1017_v10 = vmul.f32 %v1015_v9, %v1007_v31 }
0x1178   :  { %1019 = vrot.lane.b32.xlu0 %v1017_v10, %s1816_s19 }
0x117d   :  { %v1083_v16 = vpop.permute.xlu2 %1082 }
0x117e   :  { %v1085_v17 = vmul.f32 %v1083_v16, %v1075_v44 }
0x1180   :  { %1087 = vrot.lane.b32.xlu2 %v1085_v17, %s1816_s19 }
0x11da   :  { %v1088_v22 = vpop.permute.xlu2 %1087 }
0x11db   :  { %v1090_v23 = vadd.f32 %v1088_v22, %v1080_v21 }
0x11dd   :  { %1598 = vtanh.f32 %v1090_v23  ;;  %v1107_v42 = vsub.f32 %v1090_v23, %v1078_v19 }
0x11e3   :  { %v1599_v24 = vpop.eup %1598 }
0x11e4   :  { %1093 = vrot.lane.b32.xlu2 %v1599_v24, %s1811_s26 }
0x11ea   :  { %v1020_v26 = vpop.permute.xlu0 %1019 }
0x11eb   :  { %v1022_v27 = vadd.f32 %v1020_v26, %v1012_v25 }
0x11ed   :  { %1600 = vtanh.f32 %v1022_v27  ;;  %v1039_v46 = vsub.f32 %v1022_v27, %v1010_v18 }
0x11f3   :  { %v1601_v59 = vpop.eup %1600 }
0x11f4   :  { %1025 = vrot.lane.b32.xlu0 %v1601_v59, %s1811_s26 }
0x11fc   :  { %1097 = vrot.lane.b32.xlu0 %v2316_v3, %s1817_s21 }
0x123e   :  { %v1094_v36 = vpop.permute.xlu2 %1093 }
0x123f   :  { %v1096_v37 = vmul.f32 %v1094_v36, %v1075_v44 }
0x1266   :  { %v1026_v1 = vpop.permute.xlu0 %1025 }
0x1267   :  { %v1028_v28 = vmul.f32 %v1026_v1, %v1007_v31 }
0x1269   :  { %v1032_v48 = vsub.f32 %v1028_v28, %v1030_v29 }
0x126b   :  { %1034 = vrot.lane.b32.xlu1 %v1032_v48, %s1816_s19 }
0x126e   :  { %v1098_v43 = vpop.permute.xlu0 %1097 }
0x126f   :  { %v1100_v45 = vsub.f32 %v1096_v37, %v1098_v43 }
0x1271   :  { %1102 = vrot.lane.b32.xlu2 %v1100_v45, %s1816_s19 }
0x1273   :  { %1041 = vrot.lane.b32.xlu1 %v1039_v46, %s1817_s21 }
0x12cb   :  { %v1103_v49 = vpop.permute.xlu2 %1102 }
0x12cc   :  { %v1105_v51 = vmul.f32 %v1103_v49, %v2366_v47 }
0x12ce   :  { %v2370_v40 = vadd.f32 %v1105_v51, %v2316_v3 }
0x12d0   :  { %1497 = vmatmul.msk.f32.vlgmr.msra.gmra.mxu3 %vm156_vm0, %v2370_v40  ;;  %v1241_v24 = vrot.slane %v2370_v40, 4 }
0x12dd   :  { %v1035_v55 = vpop.permute.xlu1 %1034 }
0x12de   :  { %v1037_v41 = vmul.f32 %v1035_v55, %v2312_v56 }
0x12e0   :  { %v2376_v2 = vadd.f32 %v1037_v41, %v2322_v62  ;;  %v148_v41 = vld [vmem:[#allocation2 + $0x1c] sm:$0xf] }
0x12e2   :  { %1115 = vrot.lane.b32.xlu0 %v2376_v2, %s1816_s19 }
0x12e5   :  { %v1042_v39 = vpop.permute.xlu1 %1041 }
0x12e6   :  { %v1044_v14 = vmul.f32 %v1042_v39, %v2312_v56 }
0x12e8   :  { %v1045_v31 = vadd.f32 %v1044_v14, %v2327_v54 }
0x12ea   :  { %1109 = vrot.lane.b32.xlu0 %v1107_v42, %s1817_s21 }
0x1353   :  { %v1206_v60 = vpop.f32.mrf.mxu3 }
0x1354   :  { %v1210_v63 = vrot.slane %v1206_v60, 4  ;;  %v1116_v0 = vpop.permute.xlu0 %1115 }
0x1355   :  { %v1118_v3 = vsel %vm156_vm0, %v2370_v40, %v1116_v0 }
0x1356   :  { %v1212_v7 = vadd.f32 %v1210_v63, %v2347_v30  ;;  %1496 = vmatmul.msk.f32.vlgmr.msra.gmra.mxu1 %vm266_vm4, %v1118_v3 }
0x1358   :  { %v1214_v57 = vmul.f32 0.5, %v1212_v7 }
0x135a   :  { %1602 = vtanh.f32 %v1214_v57 }
0x135b   :  { %1604 = vtanh.f32 %v1212_v7 }
0x135c   :  { %v1110_v61 = vpop.permute.xlu0 %1109 }
0x135d   :  { %v1112_v58 = vmul.f32 %v1110_v61, %v2366_v47 }
0x135f   :  { %v1113_v33 = vadd.f32 %v1112_v58, %v2337_v50 }
0x1360   :  { %v1603_v62 = vpop.eup %1602 }
0x1361   :  { %v1216_v5 = vmul.f32 0.5, %v1603_v62  ;;  %v1605_v53 = vpop.eup %1604  ;;  %v1220_v30 = vrot.slane %v1113_v33, 4 }
0x1363   :  { %v1217_v6 = vadd.f32 0.5, %v1216_v5 }
0x1365   :  { %v1218_v8 = vsel %vm1953_vm3, %v1605_v53, %v1217_v6 }
0x1366   :  { %1226 = vrot.lane.b32.xlu1 %v1218_v8, %s1811_s26 }
0x136e   :  { %1221 = vrot.lane.b32.xlu1 %v1220_v30, %s1816_s19 }
0x1376   :  { %1169 = vrot.lane.b32.xlu1 %v2376_v2, %s1817_s21 }
0x13d3   :  { %v1139_v34 = vpop.f32.mrf.mxu1 }
0x13d4   :  { %v1140_v32 = vadd.f32 %v2396_v4, %v1139_v34 }
0x13d6   :  { %v1143_v11 = vmul.f32 0.5, %v1140_v32 }
0x13d8   :  { %1606 = vtanh.f32 %v1143_v11  ;;  %v1227_v15 = vpop.permute.xlu1 %1226 }
0x13d9   :  { %1608 = vtanh.f32 %v1140_v32  ;;  %v1229_v52 = vmul.f32 %v1227_v15, %v1218_v8  ;;  %v1320_v32 = vld [vmem:[#allocation10 + $0x10] sm:$0xff] }
0x13de   :  { %v1607_v35 = vpop.eup %1606 }
0x13df   :  { %v1145_v12 = vmul.f32 0.5, %v1607_v35  ;;  %v1609_v38 = vpop.eup %1608 }
0x13e0   :  { %v1222_v16 = vpop.permute.xlu1 %1221 }
0x13e1   :  { %v1146_v50 = vadd.f32 0.5, %v1145_v12  ;;  %v1224_v17 = vmul.f32 %v1222_v16, %v1218_v8 }
0x13e3   :  { %v1147_v13 = vsel %vm1953_vm3, %v1609_v38, %v1146_v50  ;;  %v1319_v50 = vld [vmem:[#allocation10 + $0x8] sm:$0xff]  ;;  %v1318_v38 = vld [vmem:[#allocation10] sm:$0xff] }
0x13e4   :  { %1154 = vrot.lane.b32.xlu2 %v1147_v13, %s1811_s26 }
0x13e8   :  { %v1170_v27 = vpop.permute.xlu1 %1169 }
0x13ec   :  { %1149 = vrot.lane.b32.xlu2 %v1045_v31, %s1816_s19 }
0x13f4   :  { %1231 = vrot.lane.b32.xlu2 %v1229_v52, %s1816_s19 }
0x143e   :  { %v1155_v44 = vpop.permute.xlu2 %1154 }
0x143f   :  { %v1157_v9 = vmul.f32 %v1155_v44, %v1147_v13 }
0x1441   :  { %1159 = vrot.lane.b32.xlu0 %v1157_v9, %s1816_s19 }
0x1446   :  { %v1150_v10 = vpop.permute.xlu2 %1149 }
0x1447   :  { %v1152_v56 = vmul.f32 %v1150_v10, %v1147_v13 }
0x144e   :  { %v1232_v18 = vpop.permute.xlu2 %1231 }
0x144f   :  { %v1234_v19 = vadd.f32 %v1232_v18, %v1224_v17  ;;  %v1392_v18 = vld [vmem:[%s2468_s9 + $0x18] sm:$0xff] }
0x1450   :  { %1412 = vmatpush.msrb.mxu3 %v1392_v18 }
0x1451   :  { %1610 = vtanh.f32 %v1234_v19 }
0x1457   :  { %v1611_v21 = vpop.eup %1610 }
0x1458   :  { %1237 = vrot.lane.b32.xlu2 %v1611_v21, %s1811_s26  ;;  %v1391_v21 = vld [vmem:[%s2468_s9 + $0x10] sm:$0xff] }
0x1459   :  { %1413 = vmatpush.msrb.mxu3 %v1391_v21 }
0x14b2   :  { %v1238_v1 = vpop.permute.xlu2 %1237 }
0x14b3   :  { %v1160_v54 = vpop.permute.xlu0 %1159  ;;  %v1240_v28 = vmul.f32 %v1238_v1, %v1218_v8 }
0x14b4   :  { %v1162_v22 = vadd.f32 %v1160_v54, %v1152_v56 }
0x14b6   :  { %1612 = vtanh.f32 %v1162_v22  ;;  %v1179_v36 = vsub.f32 %v1162_v22, %v1150_v10  ;;  %v1390_v22 = vld [vmem:[%s2468_s9 + $0x8] sm:$0xff] }
0x14b7   :  { %1414 = vmatpush.msrb.mxu3 %v1390_v22 }
0x14bc   :  { %v1613_v23 = vpop.eup %1612 }
0x14bd   :  { %1165 = vrot.lane.b32.xlu0 %v1613_v23, %s1811_s26 }
0x14c5   :  { %1242 = vrot.lane.b32.xlu0 %v1241_v24, %s1817_s21 }
0x152f   :  { %v1166_v25 = vpop.permute.xlu0 %1165 }
0x1530   :  { %v1168_v26 = vmul.f32 %v1166_v25, %v1147_v13  ;;  %v1389_v25 = vld [vmem:[%s2468_s9] sm:$0xff] }
0x1531   :  { %1415 = vmatpush.msrb.mxu3 %v1389_v25 }
0x1532   :  { %v1172_v59 = vsub.f32 %v1168_v26, %v1170_v27 }
0x1534   :  { %1174 = vrot.lane.b32.xlu1 %v1172_v59, %s1816_s19 }
0x1537   :  { %v1243_v29 = vpop.permute.xlu0 %1242 }
0x1538   :  { %v1245_v48 = vsub.f32 %v1240_v28, %v1243_v29 }
0x153a   :  { %v1247_v37 = vrot.slane %v1245_v48, 4 }
0x153c   :  { %1248 = vrot.lane.b32.xlu2 %v1247_v37, %s1816_s19  ;;  %1181 = vrot.lane.b32.xlu1 %v1179_v36, %s1817_s21 }
0x1596   :  { %v1249_v42 = vpop.permute.xlu2 %1248 }
0x1597   :  { %v1251_v60 = vmul.f32 %v1249_v42, %v148_v41 }
0x1599   :  { %v1252_v63 = vadd.f32 %v1251_v60, %v2370_v40 }
0x15a6   :  { %v1175_v43 = vpop.permute.xlu1 %1174 }
0x15a7   :  { %v1177_v45 = vmul.f32 %v1175_v43, %v2366_v47 }
0x15a9   :  { %v1178_v46 = vadd.f32 %v1177_v45, %v2376_v2 }
0x15ab   :  { %1254 = vrot.lane.b32.xlu0 %v1178_v46, %s1816_s19 }
0x15ae   :  { %v1182_v49 = vpop.permute.xlu1 %1181 }
0x15af   :  { %v1184_v51 = vmul.f32 %v1182_v49, %v2366_v47 }
0x15b1   :  { %v1185_v55 = vadd.f32 %v1184_v51, %v1045_v31  ;;  %v1522_v31 = vld [vmem:[%s2467_s8] ss:$0 sm:$0xff] }
0x15b3   :  { %1288 = vrot.lane.b32.xlu0 %v1185_v55, %s1816_s19 }
0x15bb   :  { %1308 = vrot.lane.b32.xlu0 %v1178_v46, %s1817_s21 }
0x161d   :  { %v1255_v0 = vpop.permute.xlu0 %1254 }
0x161e   :  { %v1257_v3 = vsel %vm156_vm0, %v1252_v63, %v1255_v0  ;;  %v1818_v0 = vmov -1.0  }
0x161f   :  { %1498 = vmatmul.msk.f32.vlgmr.msrb.gmra.mxu0 %vm266_vm4, %v1257_v3 }
0x1625   :  { %v1289_v58 = vpop.permute.xlu0 %1288 }
0x162d   :  { %v1309_v35 = vpop.permute.xlu0 %1308 }
0x169c   :  { %v1278_v2 = vpop.f32.mrf.mxu0 }
0x169d   :  { %v1279_v7 = vadd.f32 %v2396_v4, %v1278_v2  ;;  %v1321_v4 = vld [vmem:[#allocation10 + $0x18] sm:$0xff] }
0x169e   :  { %1341 = vmatpush.msrb.mxu2 %v1321_v4 }
0x169f   :  { %v1282_v57 = vmul.f32 0.5, %v1279_v7 }
0x16a0   :  { %1342 = vmatpush.msrb.mxu2 %v1320_v32 }
0x16a1   :  { %1614 = vtanh.f32 %v1282_v57 }
0x16a2   :  { %1616 = vtanh.f32 %v1279_v7  ;;  %1343 = vmatpush.msrb.mxu2 %v1319_v50 }
0x16a4   :  { %1344 = vmatpush.msrb.mxu2 %v1318_v38 }
0x16a7   :  { %v1615_v47 = vpop.eup %1614 }
0x16a8   :  { %v1284_v62 = vmul.f32 0.5, %v1615_v47  ;;  %v1617_v61 = vpop.eup %1616 }
0x16aa   :  { %v1285_v5 = vadd.f32 0.5, %v1284_v62  ;;  %v1523_v62 = vld [vmem:[%s2469_s10] ss:$0 sm:$0xff]  ;;  %s1452_s10 = sshll.u32 %s2471_s12, 4  ;;  %s1453_s10 = int_to_ptr.hbm [resolvable:$true] %s1452_s10 }
0x16ac   :  { %v1286_v6 = vsel %vm1953_vm3, %v1617_v61, %v1285_v5  ;;  %v1422_v61 = vld [vmem:[%s2470_s11] sm:$0xf] }
0x16ad   :  { %1293 = vrot.lane.b32.xlu2 %v1286_v6, %s1811_s26  ;;  %v1291_v8 = vmul.f32 %v1289_v58, %v1286_v6 }
0x1707   :  { %v1294_v40 = vpop.permute.xlu2 %1293 }
0x1708   :  { %v1296_v53 = vmul.f32 %v1294_v40, %v1286_v6 }
0x170a   :  { %1298 = vrot.lane.b32.xlu1 %v1296_v53, %s1816_s19 }
0x177c   :  { %v1299_v33 = vpop.permute.xlu1 %1298 }
0x177d   :  { %v1301_v30 = vadd.f32 %v1299_v33, %v1291_v8 }
0x177f   :  { %1618 = vtanh.f32 %v1301_v30 }
0x1785   :  { %v1619_v34 = vpop.eup %1618 }
0x1786   :  { %1304 = vrot.lane.b32.xlu2 %v1619_v34, %s1811_s26 }
0x17e0   :  { %v1305_v20 = vpop.permute.xlu2 %1304 }
0x17e1   :  { %v1307_v11 = vmul.f32 %v1305_v20, %v1286_v6 }
0x17e3   :  { %v1311_v12 = vsub.f32 %v1307_v11, %v1309_v35 }
0x17e5   :  { %1313 = vrot.lane.b32.xlu1 %v1311_v12, %s1816_s19 }
0x1857   :  { %v1314_v39 = vpop.permute.xlu1 %1313 }
0x1858   :  { %v1316_v13 = vmul.f32 %v1314_v39, %v148_v41 }
0x185a   :  { %v1317_v14 = vadd.f32 %v1316_v13, %v1178_v46 }
0x185c   :  { %1499 = vmatmul.msk.f32.vlgmr.msrb.gmra.mxu2 %vm156_vm0, %v1317_v14 }
0x18df   :  { %v1346_v15 = vpop.f32.mrf.mxu2 }
0x18e0   :  { %v1347_v52 = vadd.f32 %v1522_v31, %v1346_v15 }
0x18e2   :  { %v1350_v44 = vmul.f32 0.70710677, %v1347_v52  ;;  %v1349_v7 = vmul.f32 0.5, %v1347_v52 }
0x18e4   :  { %v1353_v9 = vand.u32 2147483647, %v1350_v44  ;;  %vm1351_vm9 = vcmp.ge.f32.partialorder %v1350_v44, 0.0 }
0x18e5   :  { %v1352_v3 = vsel %vm1351_vm9, 1.0, %v1818_v0 }
0x18e6   :  { %v1354_v10 = vmul.f32 0.3275911, %v1353_v9  ;;  %v1380_v28 = vsub.f32 0.0, %v1353_v9 }
0x18e8   :  { %v1355_v16 = vadd.f32 1.0, %v1354_v10  ;;  %v1381_v36 = vmul.f32 %v1380_v28, %v1353_v9 }
0x18ea   :  { %1620 = vrcp.f32 %v1355_v16  ;;  %v1367_v54 = vand.u32 2147483648, %v1355_v16  ;;  %v1365_v24 = vand.u32 2147483647, %v1355_v16  ;;  %vm1361_vm6 = vweird.f32 %v1355_v16 }
0x18eb   :  { %v1382_v45 = vmul.f32 1.442695, %v1381_v36 }
0x18ec   :  { %v1368_v27 = vor.u32 1.1754944e-38, %v1367_v54  ;;  %vm1366_vm8 = vcmp.eq.f32.partialorder %v1365_v24, 8.507059e+37 }
0x18ed   :  { %1622 = vpow2.f32 %v1382_v45 }
0x18f0   :  { %v1621_v17 = vpop.eup %1620 }
0x18f1   :  { %v1357_v19 = vmul.f32 %v1621_v17, %v1355_v16  ;;  %vm1362_vm5 = vweird.f32 %v1621_v17 }
0x18f2   :  { %vm1363_vm7 = vmor %vm1361_vm6, %vm1362_vm5 }
0x18f3   :  { %v1358_v56 = vsub.f32 1.0, %v1357_v19  ;;  %v1623_v42 = vpop.eup %1622 }
0x18f5   :  { %v1359_v23 = vmul.f32 %v1621_v17, %v1358_v56 }
0x18f7   :  { %v1360_v26 = vadd.f32 %v1621_v17, %v1359_v23 }
0x18f9   :  { %v1364_v59 = vsel %vm1363_vm7, %v1621_v17, %v1360_v26 }
0x18fa   :  { %v1369_v1 = vsel %vm1366_vm8, %v1368_v27, %v1364_v59 }
0x18fb   :  { %v1371_v29 = vmul.f32 1.0614054, %v1369_v1 }
0x18fd   :  { %v1372_v48 = vadd.f32 -1.4531521, %v1371_v29 }
0x18ff   :  { %v1373_v37 = vmul.f32 %v1372_v48, %v1369_v1 }
0x1901   :  { %v1374_v43 = vadd.f32 1.4214138, %v1373_v37 }
0x1903   :  { %v1375_v46 = vmul.f32 %v1374_v43, %v1369_v1 }
0x1905   :  { %v1376_v49 = vadd.f32 -0.28449672, %v1375_v46 }
0x1907   :  { %v1377_v51 = vmul.f32 %v1376_v49, %v1369_v1 }
0x1909   :  { %v1378_v55 = vadd.f32 0.2548296, %v1377_v51 }
0x190b   :  { %v1379_v41 = vmul.f32 %v1378_v55, %v1369_v1 }
0x190d   :  { %v1384_v60 = vmul.f32 %v1623_v42, %v1379_v41 }
0x190f   :  { %v1385_v63 = vsub.f32 1.0, %v1384_v60 }
0x1911   :  { %v1386_v2 = vmul.f32 %v1385_v63, %v1352_v3 }
0x1913   :  { %v1387_v57 = vadd.f32 1.0, %v1386_v2 }
0x1915   :  { %v1388_v47 = vmul.f32 %v1387_v57, %v1349_v7 }
0x1917   :  { %1500 = vmatmul.msk.f32.vlgmr.msrb.gmra.mxu3 %vm156_vm0, %v1388_v47 }
0x199a   :  { %v1417_v5 = vpop.f32.mrf.mxu3 }
0x199b   :  { %v1418_v6 = vadd.f32 %v1523_v62, %v1417_v5 }
0x199d   :  { %v1423_v40 = vsub.f32 %v1418_v6, %v1422_v61  ;;  %1421 = vst.msk [vmem:[#allocation11] sm:$0xf] %vm1420_vm10, %v1418_v6 }
0x199e   :  { %1455 = dma.vmem_to_hbm [thread:$0]  %s1451_s2, 64, %s1453_s10, [#allocation4]  }
0x199f   :  { %v1424_v53 = vmul.f32 %v1423_v40, %v1423_v40 }
0x19a1   :  { %v1425_v58 = vsel %vm1420_vm10, %v1424_v53, 0.0 }
0x19a2   :  { %1426 = vadd.xlane.f32.xlu2 %v1425_v58 }
0x1a15   :  { %v1427_v8 = vpop.xlane.xlu2 %1426 }
0x1a16   :  { %v1428_v33 = vrot.slane %v1427_v8, 4 }
0x1a18   :  { %v1429_v30 = vadd.f32 %v1428_v33, %v1427_v8 }
0x1a1a   :  { %v1430_v34 = vrot.slane %v1429_v30, 2 }
0x1a1c   :  { %v1431_v4 = vadd.f32 %v1430_v34, %v1429_v30 }
0x1a1e   :  { %v1432_v32 = vrot.slane %v1431_v4, 1 }
0x1a20   :  { %v1433_v20 = vadd.f32 %v1432_v32, %v1431_v4 }
0x1a22   :  { %1501 = vpush %v1433_v20 }
0x1a53   :  { %s1502_s11 = spop %1501 }
0x1a54   :  { %s1435_s22 = smul.f32 0.010416667, %s1502_s11 }
0x1a56   :  { %s1436_s23 = smul.f32 0.5, %s1435_s22 }
0x1a58   :  { %v1437_v11 = vstv %s1436_s23 }
0x1a59   :  { %1624 = vtanh.f32 %v1437_v11 }
0x1a5f   :  { %v1625_v35 = vpop.eup %1624 }
0x1a60   :  { %1503 = vpush %v1625_v35 }
0x1a91   :  { %s1504_s24 = spop %1503 }
0x1a92   :  { %s1440_s12 = smul.f32 0.5, %s1504_s24 }
0x1a94   :  { %s1441_s28 = sadd.f32 0.5, %s1440_s12 }
0x1a96   :  { %v1442_v12 = vstv %s1441_s28 }
0x1a97   :  { %1444 = vst.msk [vmem:[#allocation12] sm:$0x1] %vm1443_vm11, %v1442_v12 }
0x1a98   :  { %1466 = dma.vmem_to_hbm [thread:$0]  %s1462_s27, 16, %s1464_s4, [#allocation13]  }
0x1a99   :  { %1802 = dma.done.wait [#allocation4], 64  }
0x1a9a   :  { %1803 = vsyncadd [#allocation4], 4294967232 }
0x1a9b   :  { %1804 = dma.done.wait [#allocation13], 16  }
0x1a9c   :  { %1805 = vsyncadd [#allocation13], 4294967280 }
0x1a9d   :  { %1475 = vsyncpa [#allocation3], 1 }
0x1a9e   :  { %1476 = vsyncpa [#allocation6], 1 }
0x1a9f   :  { %1477 = vsyncpa [#allocation9], 1 }
0x1aa0   :  { %1478 = vsyncpa [#allocation4], 1 }
0x1aa1   :  { %1479 = vsyncpa [#allocation13], 1 }

</bundles_post_ra>
